<compile_context>
chip_gen: v7x
topology: tpu7x:2x2x1
jax: 0.10.0
libtpu: 0.0.40
codegen_flags: <defaults>
</compile_context>

<pallas_src>
import jax
import jax.numpy as jnp
import numpy as np
from jax.experimental import pallas as pl
from jax.experimental.pallas import tpu as pltpu

GENERATOR_PARAM = 100
LEAK_FACTOR = 0.2
VOCAB_SIZE = 2000
HID_PAD = 128  # hidden width padded 100 -> 128 (lane-aligned)


def _disc_kernel(x_ref, w1_ref, b1_ref, w2_ref, b2_ref, o_ref):
    """One batch tile.

    x_ref : (TB, VOCAB)       activation tile (pipelined over the batch grid)
    w1_ref: (VOCAB, HID_PAD)  VMEM-resident (constant index_map)
    b1_ref: (1, HID_PAD)      zero-padded bias
    w2_ref: (1, HID_PAD)      second-layer weights as a zero-padded row
    b2_ref: (1, 1)            scalar bias in SMEM
    o_ref : (1, TB)           lane-dense output row
    """
    # Layer 1 on the MXU: (TB, V) @ (V, 128), f32 accumulation.
    h = jnp.dot(x_ref[...], w1_ref[...], preferred_element_type=jnp.float32)
    h = h + b1_ref[...]
    # LeakyReLU(0.2).  Padded hidden columns stay exactly 0 (w1/b1 zero-padded).
    h = jnp.where(h > 0, h, LEAK_FACTOR * h)
    # Layer 2 (out_features == 1): VPU multiply + cross-lane reduce instead of
    # an N=1 MXU matmul; padded columns of w2 are 0 so they contribute nothing.
    # Result is stored lane-dense into the (1, TB) output row.
    o_ref[0, :] = jnp.sum(h * w2_ref[...], axis=-1) + b2_ref[0, 0]


def discriminator_forward(x, w1, b1, w2, b2, *, tb=512,
                          compute_dtype=jnp.float32):
    """x: (B, VOCAB_SIZE) f32; w1: (VOCAB_SIZE, HID); b1: (HID,);
    w2: (HID,); b2: () scalar.  Returns (B,) f32 (matches torch .view(-1))."""
    B, V = x.shape
    hid = w1.shape[1]
    pad_h = HID_PAD - hid

    # Zero-pad the hidden dim to 128 so every MXU pass / vreg is full.
    w1p = jnp.pad(w1, ((0, 0), (0, pad_h))).astype(compute_dtype)
    b1p = jnp.pad(b1.reshape(1, -1), ((0, 0), (0, pad_h))).astype(jnp.float32)
    w2p = jnp.pad(w2.reshape(1, -1), ((0, 0), (0, pad_h))).astype(jnp.float32)
    b2p = jnp.reshape(b2, (1, 1)).astype(jnp.float32)

    # Batch tile: multiple of 128 (lane-dense output + sublane alignment),
    # capped at `tb` rows so double-buffered x tiles stay well inside the
    # default scoped-VMEM limit on every TPU generation.
    tb = min(tb, max(128, pl.cdiv(B, 128) * 128))
    n_tiles = pl.cdiv(B, tb)
    b_pad = n_tiles * tb

    xp = x.astype(compute_dtype)
    if b_pad != B:
        xp = jnp.pad(xp, ((0, b_pad - B), (0, 0)))

    out = pl.pallas_call(
        _disc_kernel,
        out_shape=jax.ShapeDtypeStruct((1, b_pad), jnp.float32),
        grid=(n_tiles,),
        in_specs=[
            pl.BlockSpec((tb, V), lambda i: (i, 0)),             # x (tiled)
            pl.BlockSpec((V, HID_PAD), lambda i: (0, 0)),        # w1 (resident)
            pl.BlockSpec((1, HID_PAD), lambda i: (0, 0)),        # b1 (resident)
            pl.BlockSpec((1, HID_PAD), lambda i: (0, 0)),        # w2 row
            pl.BlockSpec((1, 1), lambda i: (0, 0),
                         memory_space=pltpu.MemorySpace.SMEM),   # b2 scalar
        ],
        out_specs=pl.BlockSpec((1, tb), lambda i: (0, i)),       # lane-dense
        compiler_params=pltpu.CompilerParams(
            dimension_semantics=("parallel",)),
    )(xp, w1p, b1p, w2p, b2p)

    return out.reshape(-1)[:B]


def init_params(key):
    """Deterministic init mimicking nn.Linear's uniform(-1/sqrt(fan_in), +)."""
    k1, k2, k3, k4 = jax.random.split(key, 4)
    bound1 = 1.0 / np.sqrt(VOCAB_SIZE)
    bound2 = 1.0 / np.sqrt(GENERATOR_PARAM)
    w1 = jax.random.uniform(k1, (VOCAB_SIZE, GENERATOR_PARAM), jnp.float32,
                            -bound1, bound1)
    b1 = jax.random.uniform(k2, (GENERATOR_PARAM,), jnp.float32,
                            -bound1, bound1)
    w2 = jax.random.uniform(k3, (GENERATOR_PARAM,), jnp.float32,
                            -bound2, bound2)
    b2 = jax.random.uniform(k4, (), jnp.float32, -bound2, bound2)
    return w1, b1, w2, b2


def _reference(x, w1, b1, w2, b2):
    h = x @ w1 + b1
    h = jnp.where(h > 0, h, LEAK_FACTOR * h)
    return h @ w2 + b2


if __name__ == "__main__":
    key = jax.random.PRNGKey(0)
    kx, kp = jax.random.split(key)
    B = 8
    x = jax.random.normal(kx, (B, VOCAB_SIZE), jnp.float32)
    w1, b1, w2, b2 = init_params(kp)

    # f32 path keeps the tolerance tight; pass compute_dtype=jnp.bfloat16 on
    # v6e/v7x for the fast MXU path (loosen tolerance to ~1e-2 in that case).
    out = discriminator_forward(x, w1, b1, w2, b2)
    out = jax.block_until_ready(out)

    ref = _reference(x, w1, b1, w2, b2)
    assert out.shape == (B,)
    np.testing.assert_allclose(np.asarray(out), np.asarray(ref),
                               rtol=1e-5, atol=1e-5)
    print("KERNEL_OK")
</pallas_src>

<mosaic_0001>
module attributes {stable_mosaic.version = 11 : i64} {
  func.func @_disc_kernel(%arg0: i32, %arg1: memref<128x2000xf32, #tpu.memory_space<vmem>>, %arg2: memref<2000x128xf32, #tpu.memory_space<vmem>>, %arg3: memref<1x128xf32, #tpu.memory_space<vmem>>, %arg4: memref<1x128xf32, #tpu.memory_space<vmem>>, %arg5: memref<1x1xf32, #tpu.memory_space<smem>>, %arg6: memref<1x128xf32, #tpu.memory_space<vmem>>) attributes {dimension_semantics = [#tpu.dimension_semantics<parallel>], iteration_bounds = array<i64: 1>, scalar_prefetch = 0 : i64, scratch_operands = 0 : i64, tpu.core_type = #tpu.core_type<tc>, window_params = [{transform_indices = @transform_0, window_bounds = array<i64: 128, 2000>}, {pipeline_mode = #tpu.pipeline_mode<synchronous>, transform_indices = @transform_1, window_bounds = array<i64: 2000, 128>}, {pipeline_mode = #tpu.pipeline_mode<synchronous>, transform_indices = @transform_2, window_bounds = array<i64: 1, 128>}, {pipeline_mode = #tpu.pipeline_mode<synchronous>, transform_indices = @transform_3, window_bounds = array<i64: 1, 128>}, {transform_indices = @transform_4, window_bounds = array<i64: 1, 1>}, {transform_indices = @transform_5, window_bounds = array<i64: 1, 128>}]} {
    %c0 = arith.constant 0 : index
    %c0_0 = arith.constant 0 : index
    %0 = vector.load %arg1[%c0, %c0_0] : memref<128x2000xf32, #tpu.memory_space<vmem>>, vector<128x2000xf32>
    %c0_1 = arith.constant 0 : index
    %c0_2 = arith.constant 0 : index
    %1 = vector.load %arg2[%c0_1, %c0_2] : memref<2000x128xf32, #tpu.memory_space<vmem>>, vector<2000x128xf32>
    %cst = arith.constant dense<0.000000e+00> : vector<128x128xf32>
    %2 = tpu.matmul %0, %1, %cst {dimension_numbers = #tpu.dot_dimension_numbers<[1], [0], [0], [1], [0, 0, 1, 1], [], []>} : vector<128x2000xf32>, vector<2000x128xf32>, vector<128x128xf32> -> vector<128x128xf32>
    %c0_3 = arith.constant 0 : index
    %c0_4 = arith.constant 0 : index
    %3 = vector.load %arg3[%c0_3, %c0_4] : memref<1x128xf32, #tpu.memory_space<vmem>>, vector<1x128xf32>
    %4 = vector.broadcast %3 : vector<1x128xf32> to vector<128x128xf32>
    %5 = arith.addf %2, %4 : vector<128x128xf32>
    %cst_5 = arith.constant 0.000000e+00 : f32
    %6 = vector.broadcast %cst_5 : f32 to vector<128x128xf32>
    %7 = arith.cmpf ogt, %5, %6 : vector<128x128xf32>
    %cst_6 = arith.constant 2.000000e-01 : f32
    %8 = vector.broadcast %cst_6 : f32 to vector<128x128xf32>
    %9 = arith.mulf %8, %5 : vector<128x128xf32>
    %10 = arith.select %7, %5, %9 : vector<128x128xi1>, vector<128x128xf32>
    %c0_7 = arith.constant 0 : index
    %c0_8 = arith.constant 0 : index
    %11 = vector.load %arg4[%c0_7, %c0_8] : memref<1x128xf32, #tpu.memory_space<vmem>>, vector<1x128xf32>
    %12 = vector.broadcast %11 : vector<1x128xf32> to vector<128x128xf32>
    %13 = arith.mulf %10, %12 : vector<128x128xf32>
    %cst_9 = arith.constant dense<0.000000e+00> : vector<128xf32>
    %14 = vector.multi_reduction <add>, %13, %cst_9 [1] : vector<128x128xf32> to vector<128xf32>
    %c0_10 = arith.constant 0 : index
    %c0_11 = arith.constant 0 : index
    %15 = memref.load %arg5[%c0_10, %c0_11] : memref<1x1xf32, #tpu.memory_space<smem>>
    %16 = vector.broadcast %15 : f32 to vector<128xf32>
    %17 = arith.addf %14, %16 : vector<128xf32>
    %c0_12 = arith.constant 0 : index
    %c0_13 = arith.constant 0 : index
    %18 = vector.load %arg6[%c0_12, %c0_13] : memref<1x128xf32, #tpu.memory_space<vmem>>, vector<1x128xf32>
    %19 = vector.shape_cast %18 : vector<1x128xf32> to vector<128xf32>
    %20 = vector.shape_cast %17 : vector<128xf32> to vector<1x128xf32>
    tpu.vector_store %arg6[%c0_12, %c0_13], %20 {strides = array<i32>} : memref<1x128xf32, #tpu.memory_space<vmem>>, vector<1x128xf32>,
    return
  }
  func.func @transform_0(%arg0: i32) -> (i32, i32) {
    %c0_i32 = arith.constant 0 : i32
    %c0_i32_0 = arith.constant 0 : i32
    return %arg0, %c0_i32 : i32, i32
  }
  func.func @transform_1(%arg0: i32) -> (i32, i32) {
    %c0_i32 = arith.constant 0 : i32
    %c0_i32_0 = arith.constant 0 : i32
    %c0_i32_1 = arith.constant 0 : i32
    return %c0_i32, %c0_i32_0 : i32, i32
  }
  func.func @transform_2(%arg0: i32) -> (i32, i32) {
    %c0_i32 = arith.constant 0 : i32
    %c0_i32_0 = arith.constant 0 : i32
    %c0_i32_1 = arith.constant 0 : i32
    return %c0_i32, %c0_i32_0 : i32, i32
  }
  func.func @transform_3(%arg0: i32) -> (i32, i32) {
    %c0_i32 = arith.constant 0 : i32
    %c0_i32_0 = arith.constant 0 : i32
    %c0_i32_1 = arith.constant 0 : i32
    return %c0_i32, %c0_i32_0 : i32, i32
  }
  func.func @transform_4(%arg0: i32) -> (i32, i32) {
    %c0_i32 = arith.constant 0 : i32
    %c0_i32_0 = arith.constant 0 : i32
    %c0_i32_1 = arith.constant 0 : i32
    return %c0_i32, %c0_i32_0 : i32, i32
  }
  func.func @transform_5(%arg0: i32) -> (i32, i32) {
    %c0_i32 = arith.constant 0 : i32
    %c0_i32_0 = arith.constant 0 : i32
    return %c0_i32, %arg0 : i32, i32
  }
}

</mosaic_0001>

<bundles_post_ra>
// kernel: tpu_custom_call.1
= control target key start
LH: loop header
LB: loop body
LE: loop exit
PB: predicated region body
PF: predicated region fallthrough
CT: control target
= control target key end

     0   :  { %s4717_s0 = inlined_call_operand.vmem [shape: f32[128,2000], index: 0, kind: input, shape index: {}]   ;;  %s4718_s1 = inlined_call_operand.vmem [shape: f32[2000,128], index: 1, kind: input, shape index: {}]   ;;  %s4719_s2 = inlined_call_operand.vmem [shape: f32[1,128], index: 2, kind: input, shape index: {}]   ;;  %s4720_s3 = inlined_call_operand.vmem [shape: f32[1,128], index: 3, kind: input, shape index: {}]   ;;  %s4721_s4 = inlined_call_operand.<no memory space> [shape: f32[1,1], index: 4, kind: input, shape index: {}]   ;;  %s4722_s5 = inlined_call_operand.hbm [shape: f32[1,128], index: 5, kind: output, shape index: {}]  }
   0x1   :  { %v294_v0 = vld [vmem:[%s4718_s1 + $0x80] sm:$0xff]  ;;  %v295_v1 = vld [vmem:[%s4718_s1 + $0x88] sm:$0xff]  ;;  %v296_v11 = vld [vmem:[%s4718_s1 + $0x90] sm:$0xff] }
   0x2   :  { %v278_v2 = vld [vmem:[%s4718_s1] sm:$0xff]  ;;  %v2586_v3 = vpack.c.bf16 %v295_v1, %v294_v0  ;;  %v279_v4 = vld [vmem:[%s4718_s1 + $0x8] sm:$0xff]  ;;  %v297_v13 = vld [vmem:[%s4718_s1 + $0x98] sm:$0xff] }
   0x3   :  { %v326_v5 = vld [vmem:[%s4718_s1 + $0x180] sm:$0xff]  ;;  %v327_v6 = vld [vmem:[%s4718_s1 + $0x188] sm:$0xff]  ;;  %v2588_v7 = vpack.c.bf16 %v279_v4, %v278_v2  ;;  %v280_v14 = vld [vmem:[%s4718_s1 + $0x10] sm:$0xff]  ;;  %v2590_v16 = vpack.c.bf16 %v297_v13, %v296_v11 }
   0x4   :  { %v2618_v8 = vpack.c.bf16 %v327_v6, %v326_v5  ;;  %v310_v9 = vld [vmem:[%s4718_s1 + $0x100] sm:$0xff]  ;;  %v311_v10 = vld [vmem:[%s4718_s1 + $0x108] sm:$0xff]  ;;  %2587 = vmatprep.subr.bf16.mxu0 %v2586_v3  ;;  %v281_v15 = vld [vmem:[%s4718_s1 + $0x18] sm:$0xff] }
   0x5   :  { %v2620_v12 = vpack.c.bf16 %v311_v10, %v310_v9  ;;  %2589 = vmatpush3.bf16.msra.mxu0 %v2588_v7  ;;  %v2592_v17 = vpack.c.bf16 %v281_v15, %v280_v14  ;;  %v328_v18 = vld [vmem:[%s4718_s1 + $0x190] sm:$0xff]  ;;  %v329_v19 = vld [vmem:[%s4718_s1 + $0x198] sm:$0xff]  ;;  %v298_v23 = vld [vmem:[%s4718_s1 + $0xa0] sm:$0xff] }
   0x6   :  { %2619 = vmatprep.subr.bf16.mxu1 %v2618_v8  ;;  %v312_v20 = vld [vmem:[%s4718_s1 + $0x110] sm:$0xff]  ;;  %v2622_v21 = vpack.c.bf16 %v329_v19, %v328_v18  ;;  %v313_v22 = vld [vmem:[%s4718_s1 + $0x118] sm:$0xff]  ;;  %v299_v24 = vld [vmem:[%s4718_s1 + $0xa8] sm:$0xff]  ;;  %2591 = vmatprep.subr.bf16.mxu0 %v2590_v16 }
   0x7   :  { %2621 = vmatpush3.bf16.msra.mxu1 %v2620_v12  ;;  %v2624_v25 = vpack.c.bf16 %v313_v22, %v312_v20  ;;  %v2594_v26 = vpack.c.bf16 %v299_v24, %v298_v23  ;;  %v282_v27 = vld [vmem:[%s4718_s1 + $0x20] sm:$0xff]  ;;  %v283_v28 = vld [vmem:[%s4718_s1 + $0x28] sm:$0xff]  ;;  %v300_v35 = vld [vmem:[%s4718_s1 + $0xb0] sm:$0xff] }
   0x8   :  { %v330_v29 = vld [vmem:[%s4718_s1 + $0x1a0] sm:$0xff]  ;;  %2623 = vmatprep.subr.bf16.mxu1 %v2622_v21  ;;  %v331_v30 = vld [vmem:[%s4718_s1 + $0x1a8] sm:$0xff]  ;;  %v2596_v33 = vpack.c.bf16 %v283_v28, %v282_v27  ;;  %v301_v36 = vld [vmem:[%s4718_s1 + $0xb8] sm:$0xff] }
   0x9   :  { %v314_v31 = vld [vmem:[%s4718_s1 + $0x120] sm:$0xff]  ;;  %v315_v32 = vld [vmem:[%s4718_s1 + $0x128] sm:$0xff]  ;;  %2593 = vmatpush3.bf16.msra.mxu0 %v2592_v17  ;;  %v2626_v34 = vpack.c.bf16 %v331_v30, %v330_v29  ;;  %v284_v37 = vld [vmem:[%s4718_s1 + $0x30] sm:$0xff]  ;;  %v2598_v39 = vpack.c.bf16 %v301_v36, %v300_v35 }
   0xa   :  { %2595 = vmatprep.subr.bf16.mxu0 %v2594_v26  ;;  %v2628_v38 = vpack.c.bf16 %v315_v32, %v314_v31  ;;  %v285_v40 = vld [vmem:[%s4718_s1 + $0x38] sm:$0xff]  ;;  %v332_v41 = vld [vmem:[%s4718_s1 + $0x1b0] sm:$0xff]  ;;  %v302_v46 = vld [vmem:[%s4718_s1 + $0xc0] sm:$0xff] }
   0xb   :  { %2625 = vmatpush3.bf16.msra.mxu1 %v2624_v25  ;;  %v333_v42 = vld [vmem:[%s4718_s1 + $0x1b8] sm:$0xff]  ;;  %v316_v44 = vld [vmem:[%s4718_s1 + $0x130] sm:$0xff]  ;;  %v303_v47 = vld [vmem:[%s4718_s1 + $0xc8] sm:$0xff]  ;;  %v2600_v48 = vpack.c.bf16 %v285_v40, %v284_v37 }
   0xc   :  { %2627 = vmatprep.subr.bf16.mxu1 %v2626_v34  ;;  %v2630_v43 = vpack.c.bf16 %v333_v42, %v332_v41  ;;  %v317_v45 = vld [vmem:[%s4718_s1 + $0x138] sm:$0xff]  ;;  %v334_v49 = vld [vmem:[%s4718_s1 + $0x1c0] sm:$0xff]  ;;  %v335_v50 = vld [vmem:[%s4718_s1 + $0x1c8] sm:$0xff]  ;;  %v2602_v52 = vpack.c.bf16 %v303_v47, %v302_v46 }
   0xd   :  { %2597 = vmatpush3.bf16.msra.mxu0 %v2596_v33  ;;  %v2632_v51 = vpack.c.bf16 %v317_v45, %v316_v44  ;;  %v286_v53 = vld [vmem:[%s4718_s1 + $0x40] sm:$0xff]  ;;  %v287_v54 = vld [vmem:[%s4718_s1 + $0x48] sm:$0xff]  ;;  %v2634_v56 = vpack.c.bf16 %v335_v50, %v334_v49  ;;  %v304_v58 = vld [vmem:[%s4718_s1 + $0xd0] sm:$0xff] }
   0xe   :  { %2599 = vmatprep.subr.bf16.mxu0 %v2598_v39  ;;  %v318_v55 = vld [vmem:[%s4718_s1 + $0x140] sm:$0xff]  ;;  %v319_v57 = vld [vmem:[%s4718_s1 + $0x148] sm:$0xff]  ;;  %v305_v59 = vld [vmem:[%s4718_s1 + $0xd8] sm:$0xff]  ;;  %v2604_v62 = vpack.c.bf16 %v287_v54, %v286_v53 }
   0xf   :  { %2629 = vmatpush3.bf16.msra.mxu1 %v2628_v38  ;;  %v336_v60 = vld [vmem:[%s4718_s1 + $0x1d0] sm:$0xff]  ;;  %v337_v61 = vld [vmem:[%s4718_s1 + $0x1d8] sm:$0xff]  ;;  %v2636_v63 = vpack.c.bf16 %v319_v57, %v318_v55  ;;  %v2606_v0 = vpack.c.bf16 %v305_v59, %v304_v58  ;;  %v306_v6 = vld [vmem:[%s4718_s1 + $0xe0] sm:$0xff] }
  0x10   :  { %2631 = vmatprep.subr.bf16.mxu1 %v2630_v43  ;;  %v288_v1 = vld [vmem:[%s4718_s1 + $0x50] sm:$0xff]  ;;  %v289_v2 = vld [vmem:[%s4718_s1 + $0x58] sm:$0xff]  ;;  %v2638_v4 = vpack.c.bf16 %v337_v61, %v336_v60  ;;  %v307_v7 = vld [vmem:[%s4718_s1 + $0xe8] sm:$0xff] }
  0x11   :  { %2601 = vmatpush3.bf16.msra.mxu0 %v2600_v48  ;;  %v320_v3 = vld [vmem:[%s4718_s1 + $0x150] sm:$0xff]  ;;  %v321_v5 = vld [vmem:[%s4718_s1 + $0x158] sm:$0xff]  ;;  %v338_v8 = vld [vmem:[%s4718_s1 + $0x1e0] sm:$0xff]  ;;  %v2608_v10 = vpack.c.bf16 %v289_v2, %v288_v1  ;;  %v2610_v14 = vpack.c.bf16 %v307_v7, %v306_v6 }
  0x12   :  { %2603 = vmatprep.subr.bf16.mxu0 %v2602_v52  ;;  %v339_v9 = vld [vmem:[%s4718_s1 + $0x1e8] sm:$0xff]  ;;  %v290_v11 = vld [vmem:[%s4718_s1 + $0x60] sm:$0xff]  ;;  %v2640_v13 = vpack.c.bf16 %v321_v5, %v320_v3  ;;  %v308_v19 = vld [vmem:[%s4718_s1 + $0xf0] sm:$0xff] }
  0x13   :  { %2633 = vmatpush3.bf16.msra.mxu1 %v2632_v51  ;;  %v23_v12 = vld [vmem:[%s4717_s0 + $0x8] sm:$0xff]  ;;  %v322_v16 = vld [vmem:[%s4718_s1 + $0x160] sm:$0xff]  ;;  %v2642_v18 = vpack.c.bf16 %v339_v9, %v338_v8  ;;  %v309_v20 = vld [vmem:[%s4718_s1 + $0xf8] sm:$0xff] }
  0x14   :  { %2635 = vmatprep.subr.bf16.mxu1 %v2634_v56  ;;  %v291_v15 = vld [vmem:[%s4718_s1 + $0x68] sm:$0xff]  ;;  %648 = vmatprep.mubr.f32.mxu0 %v23_v12  ;;  %v25_v21 = vld [vmem:[%s4717_s0 + $0x18] sm:$0xff]  ;;  %v340_v22 = vld [vmem:[%s4718_s1 + $0x1f0] sm:$0xff]  ;;  %v2614_v26 = vpack.c.bf16 %v309_v20, %v308_v19 }
  0x15   :  { %2605 = vmatpush3.bf16.msra.mxu0 %v2604_v62  ;;  %v323_v17 = vld [vmem:[%s4718_s1 + $0x168] sm:$0xff]  ;;  %v341_v23 = vld [vmem:[%s4718_s1 + $0x1f8] sm:$0xff]  ;;  %793 = vmatprep.mubr.f32.mxu1 %v25_v21  ;;  %v2612_v24 = vpack.c.bf16 %v291_v15, %v290_v11  ;;  %v292_v27 = vld [vmem:[%s4718_s1 + $0x70] sm:$0xff] }
  0x16   :  { %2607 = vmatprep.subr.bf16.mxu0 %v2606_v0  ;;  %v2644_v25 = vpack.c.bf16 %v323_v17, %v322_v16  ;;  %v293_v28 = vld [vmem:[%s4718_s1 + $0x78] sm:$0xff]  ;;  %v324_v29 = vld [vmem:[%s4718_s1 + $0x170] sm:$0xff]  ;;  %v2646_v30 = vpack.c.bf16 %v341_v23, %v340_v22  ;;  %v358_v32 = vld [vmem:[%s4718_s1 + $0x280] sm:$0xff] }
  0x17   :  { %2637 = vmatpush3.bf16.msra.mxu1 %v2636_v63  ;;  %v325_v31 = vld [vmem:[%s4718_s1 + $0x178] sm:$0xff]  ;;  %v359_v33 = vld [vmem:[%s4718_s1 + $0x288] sm:$0xff]  ;;  %v390_v34 = vld [vmem:[%s4718_s1 + $0x380] sm:$0xff]  ;;  %v2616_v36 = vpack.c.bf16 %v293_v28, %v292_v27 }
  0x18   :  { %2639 = vmatprep.subr.bf16.mxu1 %v2638_v4  ;;  %v391_v35 = vld [vmem:[%s4718_s1 + $0x388] sm:$0xff]  ;;  %v2648_v37 = vpack.c.bf16 %v325_v31, %v324_v29  ;;  %v2650_v38 = vpack.c.bf16 %v359_v33, %v358_v32  ;;  %v342_v39 = vld [vmem:[%s4718_s1 + $0x200] sm:$0xff]  ;;  %v360_v44 = vld [vmem:[%s4718_s1 + $0x290] sm:$0xff] }
  0x19   :  { %2609 = vmatpush3.bf16.msra.mxu0 %v2608_v10  ;;  %v343_v40 = vld [vmem:[%s4718_s1 + $0x208] sm:$0xff]  ;;  %v2682_v41 = vpack.c.bf16 %v391_v35, %v390_v34  ;;  %v374_v42 = vld [vmem:[%s4718_s1 + $0x300] sm:$0xff]  ;;  %v361_v45 = vld [vmem:[%s4718_s1 + $0x298] sm:$0xff] }
  0x1a   :  { %2611 = vmatprep.subr.bf16.mxu0 %v2610_v14  ;;  %v375_v43 = vld [vmem:[%s4718_s1 + $0x308] sm:$0xff]  ;;  %v22_v46 = vld [vmem:[%s4717_s0] sm:$0xff]  ;;  %v2652_v47 = vpack.c.bf16 %v343_v40, %v342_v39  ;;  %v392_v48 = vld [vmem:[%s4718_s1 + $0x390] sm:$0xff]  ;;  %v2654_v54 = vpack.c.bf16 %v361_v45, %v360_v44 }
  0x1b   :  { %2641 = vmatpush3.bf16.msra.mxu1 %v2640_v13  ;;  %v393_v49 = vld [vmem:[%s4718_s1 + $0x398] sm:$0xff]  ;;  %v24_v50 = vld [vmem:[%s4717_s0 + $0x10] sm:$0xff]  ;;  %v39_v51 = vld [vmem:[%s4717_s0 + $0x88] sm:$0xff]  ;;  %v2684_v53 = vpack.c.bf16 %v375_v43, %v374_v42 }
  0x1c   :  { %2643 = vmatprep.subr.bf16.mxu1 %v2642_v18  ;;  %v41_v52 = vld [vmem:[%s4717_s0 + $0x98] sm:$0xff]  ;;  %v344_v55 = vld [vmem:[%s4718_s1 + $0x210] sm:$0xff]  ;;  %v2686_v58 = vpack.c.bf16 %v393_v49, %v392_v48  ;;  %v362_v60 = vld [vmem:[%s4718_s1 + $0x2a0] sm:$0xff] }
  0x1d   :  { %2613 = vmatpush3.bf16.msra.mxu0 %v2612_v24  ;;  %v345_v56 = vld [vmem:[%s4718_s1 + $0x218] sm:$0xff]  ;;  %v376_v57 = vld [vmem:[%s4718_s1 + $0x310] sm:$0xff]  ;;  %v363_v61 = vld [vmem:[%s4718_s1 + $0x2a8] sm:$0xff] }
  0x1e   :  { %2615 = vmatprep.subr.bf16.mxu0 %v2614_v26  ;;  %v377_v59 = vld [vmem:[%s4718_s1 + $0x318] sm:$0xff]  ;;  %v38_v62 = vld [vmem:[%s4717_s0 + $0x80] sm:$0xff]  ;;  %v395_v0 = vld [vmem:[%s4718_s1 + $0x3a8] sm:$0xff]  ;;  %v2656_v4 = vpack.c.bf16 %v345_v56, %v344_v55  ;;  %v2658_v6 = vpack.c.bf16 %v363_v61, %v362_v60 }
  0x1f   :  { %2645 = vmatpush3.bf16.msra.mxu1 %v2644_v25  ;;  %v394_v63 = vld [vmem:[%s4718_s1 + $0x3a0] sm:$0xff]  ;;  %v40_v1 = vld [vmem:[%s4717_s0 + $0x90] sm:$0xff]  ;;  %v55_v2 = vld [vmem:[%s4717_s0 + $0x108] sm:$0xff]  ;;  %v2688_v5 = vpack.c.bf16 %v377_v59, %v376_v57 }
  0x20   :  { %2647 = vmatprep.subr.bf16.mxu1 %v2646_v30  ;;  %v57_v3 = vld [vmem:[%s4717_s0 + $0x118] sm:$0xff]  ;;  %v346_v7 = vld [vmem:[%s4718_s1 + $0x220] sm:$0xff]  ;;  %v347_v8 = vld [vmem:[%s4718_s1 + $0x228] sm:$0xff]  ;;  %v2690_v10 = vpack.c.bf16 %v395_v0, %v394_v63 }
  0x21   :  { %2617 = vmatpush3.bf16.msra.mxu0 %v2616_v36  ;;  %v378_v9 = vld [vmem:[%s4718_s1 + $0x320] sm:$0xff]  ;;  %v379_v11 = vld [vmem:[%s4718_s1 + $0x328] sm:$0xff]  ;;  %v364_v12 = vld [vmem:[%s4718_s1 + $0x2b0] sm:$0xff]  ;;  %v2660_v18 = vpack.c.bf16 %v347_v8, %v346_v7 }
  0x22   :  { %2651 = vmatprep.subr.bf16.mxu0 %v2650_v38  ;;  %v365_v13 = vld [vmem:[%s4718_s1 + $0x2b8] sm:$0xff]  ;;  %v54_v14 = vld [vmem:[%s4717_s0 + $0x100] sm:$0xff]  ;;  %v56_v15 = vld [vmem:[%s4717_s0 + $0x110] sm:$0xff]  ;;  %v2692_v21 = vpack.c.bf16 %v379_v11, %v378_v9 }
  0x23   :  { %2649 = vmatpush3.bf16.msra.mxu1 %v2648_v37  ;;  %v71_v16 = vld [vmem:[%s4717_s0 + $0x188] sm:$0xff]  ;;  %v73_v17 = vld [vmem:[%s4717_s0 + $0x198] sm:$0xff]  ;;  %v396_v19 = vld [vmem:[%s4718_s1 + $0x3b0] sm:$0xff]  ;;  %v2662_v22 = vpack.c.bf16 %v365_v13, %v364_v12 }
  0x24   :  { %2683 = vmatprep.subr.bf16.mxu1 %v2682_v41  ;;  %649 = vmatmul.mubr.f32.vlgmr.msra.gmra.mrb[0].mxu0 %v22_v46  ;;  %v397_v20 = vld [vmem:[%s4718_s1 + $0x3b8] sm:$0xff]  ;;  %v348_v23 = vld [vmem:[%s4718_s1 + $0x230] sm:$0xff]  ;;  %v366_v28 = vld [vmem:[%s4718_s1 + $0x2c0] sm:$0xff] }
  0x25   :  { %2653 = vmatpush3.bf16.msra.mxu0 %v2652_v47  ;;  %653 = vmatprep.mubr.f32.mxu0 %v39_v51  ;;  %v349_v24 = vld [vmem:[%s4718_s1 + $0x238] sm:$0xff]  ;;  %v380_v25 = vld [vmem:[%s4718_s1 + $0x330] sm:$0xff]  ;;  %v2694_v26 = vpack.c.bf16 %v397_v20, %v396_v19  ;;  %v367_v29 = vld [vmem:[%s4718_s1 + $0x2c8] sm:$0xff] }
  0x26   :  { %794 = vmatmul.mubr.f32.vlgmr.msra.gmra.mrb[0].mxu1 %v24_v50  ;;  %2655 = vmatprep.subr.bf16.mxu0 %v2654_v54  ;;  %v381_v27 = vld [vmem:[%s4718_s1 + $0x338] sm:$0xff]  ;;  %v70_v30 = vld [vmem:[%s4717_s0 + $0x180] sm:$0xff]  ;;  %v72_v31 = vld [vmem:[%s4717_s0 + $0x190] sm:$0xff]  ;;  %v2664_v34 = vpack.c.bf16 %v349_v24, %v348_v23  ;;  %v2666_v37 = vpack.c.bf16 %v367_v29, %v366_v28 }
  0x27   :  { %798 = vmatprep.mubr.f32.mxu1 %v41_v52  ;;  %2685 = vmatpush3.bf16.msra.mxu1 %v2684_v53  ;;  %v87_v32 = vld [vmem:[%s4717_s0 + $0x208] sm:$0xff]  ;;  %v89_v33 = vld [vmem:[%s4717_s0 + $0x218] sm:$0xff]  ;;  %v350_v35 = vld [vmem:[%s4718_s1 + $0x240] sm:$0xff]  ;;  %v2696_v36 = vpack.c.bf16 %v381_v27, %v380_v25 }
  0x28   :  { %654 = vmatmul.mubr.f32.gmra.mrb[2].mxu0 %v38_v62  ;;  %2687 = vmatprep.subr.bf16.mxu1 %v2686_v58  ;;  %v351_v38 = vld [vmem:[%s4718_s1 + $0x248] sm:$0xff]  ;;  %v398_v39 = vld [vmem:[%s4718_s1 + $0x3c0] sm:$0xff]  ;;  %v368_v45 = vld [vmem:[%s4718_s1 + $0x2d0] sm:$0xff] }
  0x29   :  { %658 = vmatprep.mubr.f32.mxu0 %v55_v2  ;;  %2657 = vmatpush3.bf16.msra.mxu0 %v2656_v4  ;;  %v399_v40 = vld [vmem:[%s4718_s1 + $0x3c8] sm:$0xff]  ;;  %v382_v42 = vld [vmem:[%s4718_s1 + $0x340] sm:$0xff]  ;;  %v88_v46 = vld [vmem:[%s4717_s0 + $0x210] sm:$0xff]  ;;  %v2668_v48 = vpack.c.bf16 %v351_v38, %v350_v35 }
  0x2a   :  { %799 = vmatmul.mubr.f32.gmra.mrb[2].mxu1 %v40_v1  ;;  %2659 = vmatprep.subr.bf16.mxu0 %v2658_v6  ;;  %v2698_v41 = vpack.c.bf16 %v399_v40, %v398_v39  ;;  %v383_v43 = vld [vmem:[%s4718_s1 + $0x348] sm:$0xff]  ;;  %v86_v44 = vld [vmem:[%s4717_s0 + $0x200] sm:$0xff]  ;;  %v369_v49 = vld [vmem:[%s4718_s1 + $0x2d8] sm:$0xff] }
  0x2b   :  { %803 = vmatprep.mubr.f32.mxu1 %v57_v3  ;;  %2689 = vmatpush3.bf16.msra.mxu1 %v2688_v5  ;;  %v103_v47 = vld [vmem:[%s4717_s0 + $0x288] sm:$0xff]  ;;  %v105_v50 = vld [vmem:[%s4717_s0 + $0x298] sm:$0xff]  ;;  %v2700_v51 = vpack.c.bf16 %v383_v43, %v382_v42  ;;  %v2670_v52 = vpack.c.bf16 %v369_v49, %v368_v45  ;;  %v352_v53 = vld [vmem:[%s4718_s1 + $0x250] sm:$0xff] }
  0x2c   :  { %659 = vmatmul.mubr.f32.gmra.mrb[4].mxu0 %v54_v14  ;;  %2691 = vmatprep.subr.bf16.mxu1 %v2690_v10  ;;  %v353_v54 = vld [vmem:[%s4718_s1 + $0x258] sm:$0xff]  ;;  %v400_v55 = vld [vmem:[%s4718_s1 + $0x3d0] sm:$0xff]  ;;  %v102_v56 = vld [vmem:[%s4717_s0 + $0x280] sm:$0xff] }
  0x2d   :  { %663 = vmatprep.mubr.f32.mxu0 %v71_v16  ;;  %2661 = vmatpush3.bf16.msra.mxu0 %v2660_v18  ;;  %v401_v57 = vld [vmem:[%s4718_s1 + $0x3d8] sm:$0xff]  ;;  %v384_v58 = vld [vmem:[%s4718_s1 + $0x350] sm:$0xff]  ;;  %v119_v60 = vld [vmem:[%s4717_s0 + $0x308] sm:$0xff]  ;;  %v2672_v61 = vpack.c.bf16 %v353_v54, %v352_v53 }
  0x2e   :  { %804 = vmatmul.mubr.f32.gmra.mrb[4].mxu1 %v56_v15  ;;  %2663 = vmatprep.subr.bf16.mxu0 %v2662_v22  ;;  %v104_v59 = vld [vmem:[%s4717_s0 + $0x290] sm:$0xff]  ;;  %v2702_v62 = vpack.c.bf16 %v401_v57, %v400_v55  ;;  %v385_v63 = vld [vmem:[%s4718_s1 + $0x358] sm:$0xff]  ;;  %v370_v2 = vld [vmem:[%s4718_s1 + $0x2e0] sm:$0xff] }
  0x2f   :  { %808 = vmatprep.mubr.f32.mxu1 %v73_v17  ;;  %2693 = vmatpush3.bf16.msra.mxu1 %v2692_v21  ;;  %v121_v0 = vld [vmem:[%s4717_s0 + $0x318] sm:$0xff]  ;;  %v2704_v1 = vpack.c.bf16 %v385_v63, %v384_v58  ;;  %v371_v3 = vld [vmem:[%s4718_s1 + $0x2e8] sm:$0xff]  ;;  %v354_v5 = vld [vmem:[%s4718_s1 + $0x260] sm:$0xff] }
  0x30   :  { %664 = vmatmul.mubr.f32.gmra.mrb[6].mxu0 %v70_v30  ;;  %2695 = vmatprep.subr.bf16.mxu1 %v2694_v26  ;;  %v2674_v4 = vpack.c.bf16 %v371_v3, %v370_v2  ;;  %v355_v6 = vld [vmem:[%s4718_s1 + $0x268] sm:$0xff]  ;;  %v118_v7 = vld [vmem:[%s4717_s0 + $0x300] sm:$0xff]  ;;  %v120_v8 = vld [vmem:[%s4717_s0 + $0x310] sm:$0xff] }
  0x31   :  { %668 = vmatprep.mubr.f32.mxu0 %v87_v32  ;;  %2665 = vmatpush3.bf16.msra.mxu0 %v2664_v34  ;;  %v135_v9 = vld [vmem:[%s4717_s0 + $0x388] sm:$0xff]  ;;  %v2676_v10 = vpack.c.bf16 %v355_v6, %v354_v5  ;;  %v402_v11 = vld [vmem:[%s4718_s1 + $0x3e0] sm:$0xff]  ;;  %v137_v13 = vld [vmem:[%s4717_s0 + $0x398] sm:$0xff] }
  0x32   :  { %809 = vmatmul.mubr.f32.gmra.mrb[6].mxu1 %v72_v31  ;;  %2667 = vmatprep.subr.bf16.mxu0 %v2666_v37  ;;  %v403_v12 = vld [vmem:[%s4718_s1 + $0x3e8] sm:$0xff]  ;;  %v386_v15 = vld [vmem:[%s4718_s1 + $0x360] sm:$0xff]  ;;  %v372_v18 = vld [vmem:[%s4718_s1 + $0x2f0] sm:$0xff] }
  0x33   :  { %813 = vmatprep.mubr.f32.mxu1 %v89_v33  ;;  %2697 = vmatpush3.bf16.msra.mxu1 %v2696_v36  ;;  %v2706_v14 = vpack.c.bf16 %v403_v12, %v402_v11  ;;  %v387_v16 = vld [vmem:[%s4718_s1 + $0x368] sm:$0xff]  ;;  %v373_v19 = vld [vmem:[%s4718_s1 + $0x2f8] sm:$0xff]  ;;  %v134_v20 = vld [vmem:[%s4717_s0 + $0x380] sm:$0xff] }
  0x34   :  { %669 = vmatmul.mubr.f32.gmra.mrb[8].mxu0 %v86_v44  ;;  %2699 = vmatprep.subr.bf16.mxu1 %v2698_v41  ;;  %v2708_v17 = vpack.c.bf16 %v387_v16, %v386_v15  ;;  %v2678_v21 = vpack.c.bf16 %v373_v19, %v372_v18  ;;  %v356_v22 = vld [vmem:[%s4718_s1 + $0x270] sm:$0xff]  ;;  %v357_v23 = vld [vmem:[%s4718_s1 + $0x278] sm:$0xff]  ;;  %v151_v25 = vld [vmem:[%s4717_s0 + $0x408] sm:$0xff] }
  0x35   :  { %673 = vmatprep.mubr.f32.mxu0 %v103_v47  ;;  %2669 = vmatpush3.bf16.msra.mxu0 %v2668_v48  ;;  %v136_v24 = vld [vmem:[%s4717_s0 + $0x390] sm:$0xff]  ;;  %v2680_v26 = vpack.c.bf16 %v357_v23, %v356_v22  ;;  %v153_v27 = vld [vmem:[%s4717_s0 + $0x418] sm:$0xff]  ;;  %v150_v33 = vld [vmem:[%s4717_s0 + $0x400] sm:$0xff] }
  0x36   :  { %814 = vmatmul.mubr.f32.gmra.mrb[8].mxu1 %v88_v46  ;;  %2671 = vmatprep.subr.bf16.mxu0 %v2670_v52  ;;  %v404_v28 = vld [vmem:[%s4718_s1 + $0x3f0] sm:$0xff]  ;;  %v405_v29 = vld [vmem:[%s4718_s1 + $0x3f8] sm:$0xff]  ;;  %v422_v35 = vld [vmem:[%s4718_s1 + $0x480] sm:$0xff] }
  0x37   :  { %818 = vmatprep.mubr.f32.mxu1 %v105_v50  ;;  %2701 = vmatpush3.bf16.msra.mxu1 %v2700_v51  ;;  %v2710_v30 = vpack.c.bf16 %v405_v29, %v404_v28  ;;  %v388_v31 = vld [vmem:[%s4718_s1 + $0x370] sm:$0xff]  ;;  %v389_v32 = vld [vmem:[%s4718_s1 + $0x378] sm:$0xff]  ;;  %v167_v37 = vld [vmem:[%s4717_s0 + $0x488] sm:$0xff] }
  0x38   :  { %674 = vmatmul.mubr.f32.gmra.mrb[10].mxu0 %v102_v56  ;;  %2703 = vmatprep.subr.bf16.mxu1 %v2702_v62  ;;  %v2712_v34 = vpack.c.bf16 %v389_v32, %v388_v31  ;;  %v152_v36 = vld [vmem:[%s4717_s0 + $0x410] sm:$0xff]  ;;  %v423_v38 = vld [vmem:[%s4718_s1 + $0x488] sm:$0xff]  ;;  %v169_v39 = vld [vmem:[%s4717_s0 + $0x498] sm:$0xff] }
  0x39   :  { %678 = vmatprep.mubr.f32.mxu0 %v119_v60  ;;  %2673 = vmatpush3.bf16.msra.mxu0 %v2672_v61  ;;  %v2714_v40 = vpack.c.bf16 %v423_v38, %v422_v35  ;;  %v454_v41 = vld [vmem:[%s4718_s1 + $0x580] sm:$0xff]  ;;  %v455_v43 = vld [vmem:[%s4718_s1 + $0x588] sm:$0xff]  ;;  %v168_v44 = vld [vmem:[%s4717_s0 + $0x490] sm:$0xff] }
  0x3a   :  { %819 = vmatmul.mubr.f32.gmra.mrb[10].mxu1 %v104_v59  ;;  %2675 = vmatprep.subr.bf16.mxu0 %v2674_v4  ;;  %v166_v42 = vld [vmem:[%s4717_s0 + $0x480] sm:$0xff]  ;;  %v183_v45 = vld [vmem:[%s4717_s0 + $0x508] sm:$0xff]  ;;  %v2746_v46 = vpack.c.bf16 %v455_v43, %v454_v41  ;;  %v185_v47 = vld [vmem:[%s4717_s0 + $0x518] sm:$0xff] }
  0x3b   :  { %823 = vmatprep.mubr.f32.mxu1 %v121_v0  ;;  %2705 = vmatpush3.bf16.msra.mxu1 %v2704_v1  ;;  %v182_v48 = vld [vmem:[%s4717_s0 + $0x500] sm:$0xff]  ;;  %v184_v49 = vld [vmem:[%s4717_s0 + $0x510] sm:$0xff]  ;;  %v199_v50 = vld [vmem:[%s4717_s0 + $0x588] sm:$0xff] }
  0x3c   :  { %679 = vmatmul.mubr.f32.gmra.mrb[12].mxu0 %v118_v7  ;;  %2707 = vmatprep.subr.bf16.mxu1 %v2706_v14  ;;  %v201_v51 = vld [vmem:[%s4717_s0 + $0x598] sm:$0xff]  ;;  %v198_v52 = vld [vmem:[%s4717_s0 + $0x580] sm:$0xff]  ;;  %v200_v53 = vld [vmem:[%s4717_s0 + $0x590] sm:$0xff] }
  0x3d   :  { %683 = vmatprep.mubr.f32.mxu0 %v135_v9  ;;  %2677 = vmatpush3.bf16.msra.mxu0 %v2676_v10  ;;  %v215_v54 = vld [vmem:[%s4717_s0 + $0x608] sm:$0xff]  ;;  %v217_v55 = vld [vmem:[%s4717_s0 + $0x618] sm:$0xff]  ;;  %v214_v56 = vld [vmem:[%s4717_s0 + $0x600] sm:$0xff] }
  0x3e   :  { %824 = vmatmul.mubr.f32.gmra.mrb[12].mxu1 %v120_v8  ;;  %2679 = vmatprep.subr.bf16.mxu0 %v2678_v21  ;;  %v216_v57 = vld [vmem:[%s4717_s0 + $0x610] sm:$0xff]  ;;  %v231_v58 = vld [vmem:[%s4717_s0 + $0x688] sm:$0xff]  ;;  %v233_v59 = vld [vmem:[%s4717_s0 + $0x698] sm:$0xff] }
  0x3f   :  { %828 = vmatprep.mubr.f32.mxu1 %v137_v13  ;;  %2709 = vmatpush3.bf16.msra.mxu1 %v2708_v17  ;;  %v230_v60 = vld [vmem:[%s4717_s0 + $0x680] sm:$0xff]  ;;  %v232_v61 = vld [vmem:[%s4717_s0 + $0x690] sm:$0xff]  ;;  %v247_v62 = vld [vmem:[%s4717_s0 + $0x708] sm:$0xff] }
  0x40   :  { %684 = vmatmul.mubr.f32.gmra.mrb[14].mxu0 %v134_v20  ;;  %2711 = vmatprep.subr.bf16.mxu1 %v2710_v30  ;;  %v249_v63 = vld [vmem:[%s4717_s0 + $0x718] sm:$0xff]  ;;  %v246_v0 = vld [vmem:[%s4717_s0 + $0x700] sm:$0xff]  ;;  %v248_v1 = vld [vmem:[%s4717_s0 + $0x710] sm:$0xff] }
  0x41   :  { %688 = vmatprep.mubr.f32.mxu0 %v151_v25  ;;  %2681 = vmatpush3.bf16.msra.mxu0 %v2680_v26  ;;  %v263_v2 = vld [vmem:[%s4717_s0 + $0x788] sm:$0xff]  ;;  %v265_v3 = vld [vmem:[%s4717_s0 + $0x798] sm:$0xff]  ;;  %v262_v4 = vld [vmem:[%s4717_s0 + $0x780] sm:$0xff] }
  0x42   :  { %829 = vmatmul.mubr.f32.gmra.mrb[14].mxu1 %v136_v24  ;;  %2715 = vmatprep.subr.bf16.mxu0 %v2714_v40  ;;  %v264_v5 = vld [vmem:[%s4717_s0 + $0x790] sm:$0xff]  ;;  %v27_v6 = vld [vmem:[%s4717_s0 + $0x28] sm:$0xff]  ;;  %v406_v7 = vld [vmem:[%s4718_s1 + $0x400] sm:$0xff] }
  0x43   :  { %833 = vmatprep.mubr.f32.mxu1 %v153_v27  ;;  %2713 = vmatpush3.bf16.msra.mxu1 %v2712_v34  ;;  %v407_v8 = vld [vmem:[%s4718_s1 + $0x408] sm:$0xff]  ;;  %v29_v9 = vld [vmem:[%s4717_s0 + $0x38] sm:$0xff]  ;;  %v438_v10 = vld [vmem:[%s4718_s1 + $0x500] sm:$0xff] }
  0x44   :  { %689 = vmatmul.mubr.f32.gmra.mrb[16].mxu0 %v150_v33  ;;  %2747 = vmatprep.subr.bf16.mxu1 %v2746_v46  ;;  %v439_v11 = vld [vmem:[%s4718_s1 + $0x508] sm:$0xff]  ;;  %v424_v12 = vld [vmem:[%s4718_s1 + $0x490] sm:$0xff]  ;;  %v425_v13 = vld [vmem:[%s4718_s1 + $0x498] sm:$0xff]  ;;  %v2716_v15 = vpack.c.bf16 %v407_v8, %v406_v7 }
  0x45   :  { %693 = vmatprep.mubr.f32.mxu0 %v167_v37  ;;  %v26_v14 = vld [vmem:[%s4717_s0 + $0x20] sm:$0xff]  ;;  %v456_v16 = vld [vmem:[%s4718_s1 + $0x590] sm:$0xff]  ;;  %v457_v17 = vld [vmem:[%s4718_s1 + $0x598] sm:$0xff]  ;;  %v2748_v21 = vpack.c.bf16 %v439_v11, %v438_v10  ;;  %v2718_v22 = vpack.c.bf16 %v425_v13, %v424_v12 }
  0x46   :  { %834 = vmatmul.mubr.f32.gmra.mrb[16].mxu1 %v152_v36  ;;  %v28_v18 = vld [vmem:[%s4717_s0 + $0x30] sm:$0xff]  ;;  %v43_v19 = vld [vmem:[%s4717_s0 + $0xa8] sm:$0xff]  ;;  %v45_v20 = vld [vmem:[%s4717_s0 + $0xb8] sm:$0xff]  ;;  %v2750_v26 = vpack.c.bf16 %v457_v17, %v456_v16 }
  0x47   :  { %838 = vmatprep.mubr.f32.mxu1 %v169_v39  ;;  %v408_v23 = vld [vmem:[%s4718_s1 + $0x410] sm:$0xff]  ;;  %v409_v24 = vld [vmem:[%s4718_s1 + $0x418] sm:$0xff]  ;;  %v426_v28 = vld [vmem:[%s4718_s1 + $0x4a0] sm:$0xff] }
  0x48   :  { %694 = vmatmul.mubr.f32.gmra.mrb[18].mxu0 %v166_v42  ;;  %v440_v25 = vld [vmem:[%s4718_s1 + $0x510] sm:$0xff]  ;;  %v441_v27 = vld [vmem:[%s4718_s1 + $0x518] sm:$0xff]  ;;  %v427_v29 = vld [vmem:[%s4718_s1 + $0x4a8] sm:$0xff]  ;;  %v2720_v36 = vpack.c.bf16 %v409_v24, %v408_v23 }
  0x49   :  { %698 = vmatprep.mubr.f32.mxu0 %v183_v45  ;;  %v42_v30 = vld [vmem:[%s4717_s0 + $0xa0] sm:$0xff]  ;;  %v459_v32 = vld [vmem:[%s4718_s1 + $0x5a8] sm:$0xff]  ;;  %v44_v33 = vld [vmem:[%s4717_s0 + $0xb0] sm:$0xff]  ;;  %v2752_v37 = vpack.c.bf16 %v441_v27, %v440_v25  ;;  %v2722_v38 = vpack.c.bf16 %v427_v29, %v426_v28 }
  0x4a   :  { %839 = vmatmul.mubr.f32.gmra.mrb[18].mxu1 %v168_v44  ;;  %v458_v31 = vld [vmem:[%s4718_s1 + $0x5a0] sm:$0xff]  ;;  %v59_v34 = vld [vmem:[%s4717_s0 + $0x128] sm:$0xff]  ;;  %v61_v35 = vld [vmem:[%s4717_s0 + $0x138] sm:$0xff] }
  0x4b   :  { %843 = vmatprep.mubr.f32.mxu1 %v185_v47  ;;  %v410_v39 = vld [vmem:[%s4718_s1 + $0x420] sm:$0xff]  ;;  %v411_v40 = vld [vmem:[%s4718_s1 + $0x428] sm:$0xff]  ;;  %v2754_v42 = vpack.c.bf16 %v459_v32, %v458_v31  ;;  %v428_v44 = vld [vmem:[%s4718_s1 + $0x4b0] sm:$0xff] }
  0x4c   :  { %699 = vmatmul.mubr.f32.gmra.mrb[20].mxu0 %v182_v48  ;;  %v442_v41 = vld [vmem:[%s4718_s1 + $0x520] sm:$0xff]  ;;  %v443_v43 = vld [vmem:[%s4718_s1 + $0x528] sm:$0xff]  ;;  %v429_v45 = vld [vmem:[%s4718_s1 + $0x4b8] sm:$0xff] }
  0x4d   :  { %703 = vmatprep.mubr.f32.mxu0 %v199_v50  ;;  %v58_v46 = vld [vmem:[%s4717_s0 + $0x120] sm:$0xff]  ;;  %v460_v47 = vld [vmem:[%s4718_s1 + $0x5b0] sm:$0xff]  ;;  %v461_v48 = vld [vmem:[%s4718_s1 + $0x5b8] sm:$0xff] }
  0x4e   :  { %844 = vmatmul.mubr.f32.gmra.mrb[20].mxu1 %v184_v49  ;;  %v60_v49 = vld [vmem:[%s4717_s0 + $0x130] sm:$0xff]  ;;  %v75_v50 = vld [vmem:[%s4717_s0 + $0x1a8] sm:$0xff]  ;;  %v414_v7 = vld [vmem:[%s4718_s1 + $0x440] sm:$0xff] }
  0x4f   :  { %848 = vmatprep.mubr.f32.mxu1 %v201_v51  ;;  %v77_v51 = vld [vmem:[%s4717_s0 + $0x1b8] sm:$0xff]  ;;  %v415_v8 = vld [vmem:[%s4718_s1 + $0x448] sm:$0xff]  ;;  %v432_v12 = vld [vmem:[%s4718_s1 + $0x4d0] sm:$0xff] }
  0x50   :  { %704 = vmatmul.mubr.f32.gmra.mrb[22].mxu0 %v198_v52  ;;  %v2724_v52 = vpack.c.bf16 %v411_v40, %v410_v39  ;;  %v447_v11 = vld [vmem:[%s4718_s1 + $0x548] sm:$0xff]  ;;  %v433_v13 = vld [vmem:[%s4718_s1 + $0x4d8] sm:$0xff]  ;;  %v92_v17 = vld [vmem:[%s4717_s0 + $0x230] sm:$0xff] }
  0x51   :  { %708 = vmatprep.mubr.f32.mxu0 %v215_v54  ;;  %v2726_v54 = vpack.c.bf16 %v429_v45, %v428_v44  ;;  %v465_v16 = vld [vmem:[%s4718_s1 + $0x5d8] sm:$0xff]  ;;  %v416_v23 = vld [vmem:[%s4718_s1 + $0x450] sm:$0xff]  ;;  %v434_v28 = vld [vmem:[%s4718_s1 + $0x4e0] sm:$0xff] }
  0x52   :  { %849 = vmatmul.mubr.f32.gmra.mrb[22].mxu1 %v200_v53  ;;  %v2756_v53 = vpack.c.bf16 %v443_v43, %v442_v41  ;;  %v417_v24 = vld [vmem:[%s4718_s1 + $0x458] sm:$0xff]  ;;  %v448_v25 = vld [vmem:[%s4718_s1 + $0x550] sm:$0xff]  ;;  %v435_v29 = vld [vmem:[%s4718_s1 + $0x4e8] sm:$0xff] }
  0x53   :  { %853 = vmatprep.mubr.f32.mxu1 %v217_v55  ;;  %v412_v55 = vld [vmem:[%s4718_s1 + $0x430] sm:$0xff]  ;;  %v449_v27 = vld [vmem:[%s4718_s1 + $0x558] sm:$0xff]  ;;  %v466_v31 = vld [vmem:[%s4718_s1 + $0x5e0] sm:$0xff] }
  0x54   :  { %709 = vmatmul.mubr.f32.gmra.mrb[24].mxu0 %v214_v56  ;;  %v413_v56 = vld [vmem:[%s4718_s1 + $0x438] sm:$0xff]  ;;  %v467_v32 = vld [vmem:[%s4718_s1 + $0x5e8] sm:$0xff]  ;;  %v418_v39 = vld [vmem:[%s4718_s1 + $0x460] sm:$0xff] }
  0x55   :  { %713 = vmatprep.mubr.f32.mxu0 %v231_v58  ;;  %v2758_v58 = vpack.c.bf16 %v461_v48, %v460_v47  ;;  %v419_v40 = vld [vmem:[%s4718_s1 + $0x468] sm:$0xff]  ;;  %v450_v41 = vld [vmem:[%s4718_s1 + $0x560] sm:$0xff]  ;;  %v436_v44 = vld [vmem:[%s4718_s1 + $0x4f0] sm:$0xff] }
  0x56   :  { %854 = vmatmul.mubr.f32.gmra.mrb[24].mxu1 %v216_v57  ;;  %v444_v57 = vld [vmem:[%s4718_s1 + $0x530] sm:$0xff]  ;;  %v451_v43 = vld [vmem:[%s4718_s1 + $0x568] sm:$0xff]  ;;  %v437_v45 = vld [vmem:[%s4718_s1 + $0x4f8] sm:$0xff] }
  0x57   :  { %858 = vmatprep.mubr.f32.mxu1 %v233_v59  ;;  %v445_v59 = vld [vmem:[%s4718_s1 + $0x538] sm:$0xff]  ;;  %v468_v47 = vld [vmem:[%s4718_s1 + $0x5f0] sm:$0xff] }
  0x58   :  { %714 = vmatmul.mubr.f32.gmra.mrb[26].mxu0 %v230_v60  ;;  %v430_v60 = vld [vmem:[%s4718_s1 + $0x4c0] sm:$0xff]  ;;  %v469_v48 = vld [vmem:[%s4718_s1 + $0x5f8] sm:$0xff] }
  0x59   :  { %718 = vmatprep.mubr.f32.mxu0 %v247_v62  ;;  %v74_v62 = vld [vmem:[%s4717_s0 + $0x1a0] sm:$0xff] }
  0x5a   :  { %859 = vmatmul.mubr.f32.gmra.mrb[26].mxu1 %v232_v61  ;;  %v431_v61 = vld [vmem:[%s4718_s1 + $0x4c8] sm:$0xff] }
  0x5b   :  { %863 = vmatprep.mubr.f32.mxu1 %v249_v63  ;;  %v462_v63 = vld [vmem:[%s4718_s1 + $0x5c0] sm:$0xff] }
  0x5c   :  { %719 = vmatmul.mubr.f32.gmra.mrb[28].mxu0 %v246_v0  ;;  %v463_v0 = vld [vmem:[%s4718_s1 + $0x5c8] sm:$0xff] }
  0x5d   :  { %723 = vmatprep.mubr.f32.mxu0 %v263_v2  ;;  %v91_v2 = vld [vmem:[%s4717_s0 + $0x228] sm:$0xff]  ;;  %v2762_v10 = vpack.c.bf16 %v463_v0, %v462_v63  ;;  %v140_v63 = vld [vmem:[%s4717_s0 + $0x3b0] sm:$0xff] }
  0x5e   :  { %864 = vmatmul.mubr.f32.gmra.mrb[28].mxu1 %v248_v1  ;;  %v76_v1 = vld [vmem:[%s4717_s0 + $0x1b0] sm:$0xff]  ;;  %v155_v0 = vld [vmem:[%s4717_s0 + $0x428] sm:$0xff] }
  0x5f   :  { %868 = vmatprep.mubr.f32.mxu1 %v265_v3  ;;  %v93_v3 = vld [vmem:[%s4717_s0 + $0x238] sm:$0xff] }
  0x60   :  { %724 = vmatmul.mubr.f32.gmra.mrb[30].mxu0 %v262_v4  ;;  %v2728_v4 = vpack.c.bf16 %v413_v56, %v412_v55  ;;  %v420_v55 = vld [vmem:[%s4718_s1 + $0x470] sm:$0xff]  ;;  %v421_v56 = vld [vmem:[%s4718_s1 + $0x478] sm:$0xff] }
  0x61   :  { %938 = vmatprep.mubr.f32.mxu0 %v27_v6  ;;  %v2730_v6 = vpack.c.bf16 %v431_v61, %v430_v60  ;;  %v486_v60 = vld [vmem:[%s4718_s1 + $0x680] sm:$0xff]  ;;  %v487_v61 = vld [vmem:[%s4718_s1 + $0x688] sm:$0xff] }
  0x62   :  { %869 = vmatmul.mubr.f32.gmra.mrb[30].mxu1 %v264_v5  ;;  %v2760_v5 = vpack.c.bf16 %v445_v59, %v444_v57  ;;  %v452_v57 = vld [vmem:[%s4718_s1 + $0x570] sm:$0xff]  ;;  %v453_v59 = vld [vmem:[%s4718_s1 + $0x578] sm:$0xff] }
  0x63   :  { %1083 = vmatprep.mubr.f32.mxu1 %v29_v9  ;;  %v446_v9 = vld [vmem:[%s4718_s1 + $0x540] sm:$0xff] }
  0x64   :  { %939 = vmatmul.mubr.f32.vlgmr.msra.gmra.mrb[32].mxu0 %v26_v14  ;;  %v90_v14 = vld [vmem:[%s4717_s0 + $0x220] sm:$0xff] }
  0x65   :  { %2717 = vmatpush3.bf16.msra.mxu0 %v2716_v15  ;;  %943 = vmatprep.mubr.f32.mxu0 %v43_v19  ;;  %v464_v15 = vld [vmem:[%s4718_s1 + $0x5d0] sm:$0xff]  ;;  %v109_v19 = vld [vmem:[%s4717_s0 + $0x2b8] sm:$0xff] }
  0x66   :  { %1084 = vmatmul.mubr.f32.vlgmr.msra.gmra.mrb[32].mxu1 %v28_v18  ;;  %2719 = vmatprep.subr.bf16.mxu0 %v2718_v22  ;;  %v107_v18 = vld [vmem:[%s4717_s0 + $0x2a8] sm:$0xff]  ;;  %v2734_v22 = vpack.c.bf16 %v433_v13, %v432_v12  ;;  %v189_v13 = vld [vmem:[%s4717_s0 + $0x538] sm:$0xff] }
  0x67   :  { %1088 = vmatprep.mubr.f32.mxu1 %v45_v20  ;;  %2749 = vmatpush3.bf16.msra.mxu1 %v2748_v21  ;;  %v2732_v20 = vpack.c.bf16 %v415_v8, %v414_v7  ;;  %v2764_v21 = vpack.c.bf16 %v447_v11, %v446_v9  ;;  %v171_v7 = vld [vmem:[%s4717_s0 + $0x4a8] sm:$0xff]  ;;  %v173_v8 = vld [vmem:[%s4717_s0 + $0x4b8] sm:$0xff]  ;;  %v2875_v9 = vmov 0.0|0.0   ;;  %v172_v11 = vld [vmem:[%s4717_s0 + $0x4b0] sm:$0xff] }
  0x68   :  { %944 = vmatmul.mubr.f32.gmra.mrb[34].mxu0 %v42_v30  ;;  %2751 = vmatprep.subr.bf16.mxu1 %v2750_v26  ;;  %v2766_v26 = vpack.c.bf16 %v465_v16, %v464_v15  ;;  %v106_v30 = vld [vmem:[%s4717_s0 + $0x2a0] sm:$0xff]  ;;  %v187_v12 = vld [vmem:[%s4717_s0 + $0x528] sm:$0xff]  ;;  %v188_v15 = vld [vmem:[%s4717_s0 + $0x530] sm:$0xff] }
  0x69   :  { %948 = vmatprep.mubr.f32.mxu0 %v59_v34  ;;  %2721 = vmatpush3.bf16.msra.mxu0 %v2720_v36  ;;  %v123_v34 = vld [vmem:[%s4717_s0 + $0x328] sm:$0xff]  ;;  %v2736_v36 = vpack.c.bf16 %v417_v24, %v416_v23  ;;  %v220_v23 = vld [vmem:[%s4717_s0 + $0x630] sm:$0xff] }
  0x6a   :  { %1089 = vmatmul.mubr.f32.gmra.mrb[34].mxu1 %v44_v33  ;;  %2723 = vmatprep.subr.bf16.mxu0 %v2722_v38  ;;  %v108_v33 = vld [vmem:[%s4717_s0 + $0x2b0] sm:$0xff]  ;;  %v2738_v38 = vpack.c.bf16 %v435_v29, %v434_v28  ;;  %v203_v16 = vld [vmem:[%s4717_s0 + $0x5a8] sm:$0xff]  ;;  %v253_v29 = vld [vmem:[%s4717_s0 + $0x738] sm:$0xff] }
  0x6b   :  { %1093 = vmatprep.mubr.f32.mxu1 %v61_v35  ;;  %2753 = vmatpush3.bf16.msra.mxu1 %v2752_v37  ;;  %v125_v35 = vld [vmem:[%s4717_s0 + $0x338] sm:$0xff]  ;;  %v2768_v37 = vpack.c.bf16 %v449_v27, %v448_v25  ;;  %v235_v24 = vld [vmem:[%s4717_s0 + $0x6a8] sm:$0xff]  ;;  %v236_v27 = vld [vmem:[%s4717_s0 + $0x6b0] sm:$0xff] }
  0x6c   :  { %949 = vmatmul.mubr.f32.gmra.mrb[36].mxu0 %v58_v46  ;;  %2755 = vmatprep.subr.bf16.mxu1 %v2754_v42  ;;  %v2770_v42 = vpack.c.bf16 %v467_v32, %v466_v31  ;;  %v122_v46 = vld [vmem:[%s4717_s0 + $0x320] sm:$0xff]  ;;  %v237_v25 = vld [vmem:[%s4717_s0 + $0x6b8] sm:$0xff]  ;;  %v251_v28 = vld [vmem:[%s4717_s0 + $0x728] sm:$0xff] }
  0x6d   :  { %953 = vmatprep.mubr.f32.mxu0 %v75_v50  ;;  %2725 = vmatpush3.bf16.msra.mxu0 %v2724_v52  ;;  %v139_v50 = vld [vmem:[%s4717_s0 + $0x3a8] sm:$0xff]  ;;  %v2740_v52 = vpack.c.bf16 %v419_v40, %v418_v39  ;;  %v252_v31 = vld [vmem:[%s4717_s0 + $0x730] sm:$0xff]  ;;  %v33_v39 = vld [vmem:[%s4717_s0 + $0x58] sm:$0xff] }
  0x6e   :  { %1094 = vmatmul.mubr.f32.gmra.mrb[36].mxu1 %v60_v49  ;;  %2727 = vmatprep.subr.bf16.mxu0 %v2726_v54  ;;  %v124_v49 = vld [vmem:[%s4717_s0 + $0x330] sm:$0xff]  ;;  %v2742_v54 = vpack.c.bf16 %v437_v45, %v436_v44  ;;  %v267_v32 = vld [vmem:[%s4717_s0 + $0x7a8] sm:$0xff]  ;;  %v502_v40 = vld [vmem:[%s4718_s1 + $0x700] sm:$0xff] }
  0x6f   :  { %1098 = vmatprep.mubr.f32.mxu1 %v77_v51  ;;  %2757 = vmatpush3.bf16.msra.mxu1 %v2756_v53  ;;  %v141_v51 = vld [vmem:[%s4717_s0 + $0x3b8] sm:$0xff]  ;;  %v2772_v53 = vpack.c.bf16 %v451_v43, %v450_v41  ;;  %v503_v41 = vld [vmem:[%s4718_s1 + $0x708] sm:$0xff]  ;;  %v30_v44 = vld [vmem:[%s4717_s0 + $0x40] sm:$0xff] }
  0x70   :  { %954 = vmatmul.mubr.f32.gmra.mrb[38].mxu0 %v74_v62  ;;  %2759 = vmatprep.subr.bf16.mxu1 %v2758_v58  ;;  %v2774_v58 = vpack.c.bf16 %v469_v48, %v468_v47  ;;  %v138_v62 = vld [vmem:[%s4717_s0 + $0x3a0] sm:$0xff]  ;;  %v489_v43 = vld [vmem:[%s4718_s1 + $0x698] sm:$0xff]  ;;  %v47_v47 = vld [vmem:[%s4717_s0 + $0xc8] sm:$0xff] }
  0x71   :  { %958 = vmatprep.mubr.f32.mxu0 %v91_v2  ;;  %2729 = vmatpush3.bf16.msra.mxu0 %v2728_v4  ;;  %v157_v2 = vld [vmem:[%s4717_s0 + $0x438] sm:$0xff]  ;;  %v2778_v4 = vpack.c.bf16 %v487_v61, %v486_v60 }
  0x72   :  { %1099 = vmatmul.mubr.f32.gmra.mrb[38].mxu1 %v76_v1  ;;  %2731 = vmatprep.subr.bf16.mxu0 %v2730_v6  ;;  %v2744_v1 = vpack.c.bf16 %v421_v56, %v420_v55  ;;  %v156_v6 = vld [vmem:[%s4717_s0 + $0x430] sm:$0xff]  ;;  %v49_v48 = vld [vmem:[%s4717_s0 + $0xd8] sm:$0xff]  ;;  %v490_v55 = vld [vmem:[%s4718_s1 + $0x6a0] sm:$0xff] }
  0x73   :  { %1103 = vmatprep.mubr.f32.mxu1 %v93_v3  ;;  %2761 = vmatpush3.bf16.msra.mxu1 %v2760_v5  ;;  %v2776_v3 = vpack.c.bf16 %v453_v59, %v452_v57  ;;  %v154_v5 = vld [vmem:[%s4717_s0 + $0x420] sm:$0xff]  ;;  %v491_v56 = vld [vmem:[%s4718_s1 + $0x6a8] sm:$0xff]  ;;  %v65_v60 = vld [vmem:[%s4717_s0 + $0x158] sm:$0xff] }
  0x74   :  { %959 = vmatmul.mubr.f32.gmra.mrb[40].mxu0 %v90_v14  ;;  %2763 = vmatprep.subr.bf16.mxu1 %v2762_v10  ;;  %v170_v10 = vld [vmem:[%s4717_s0 + $0x4a0] sm:$0xff]  ;;  %v63_v59 = vld [vmem:[%s4717_s0 + $0x148] sm:$0xff] }
  0x75   :  { %963 = vmatprep.mubr.f32.mxu0 %v107_v18  ;;  %2733 = vmatpush3.bf16.msra.mxu0 %v2732_v20  ;;  %v186_v14 = vld [vmem:[%s4717_s0 + $0x520] sm:$0xff]  ;;  %v219_v20 = vld [vmem:[%s4717_s0 + $0x628] sm:$0xff] }
  0x76   :  { %1104 = vmatmul.mubr.f32.gmra.mrb[40].mxu1 %v92_v17  ;;  %2735 = vmatprep.subr.bf16.mxu0 %v2734_v22  ;;  %v205_v17 = vld [vmem:[%s4717_s0 + $0x5b8] sm:$0xff]  ;;  %v202_v18 = vld [vmem:[%s4717_s0 + $0x5a0] sm:$0xff] }
  0x77   :  { %1108 = vmatprep.mubr.f32.mxu1 %v109_v19  ;;  %2765 = vmatpush3.bf16.msra.mxu1 %v2764_v21  ;;  %v204_v19 = vld [vmem:[%s4717_s0 + $0x5b0] sm:$0xff]  ;;  %v221_v21 = vld [vmem:[%s4717_s0 + $0x638] sm:$0xff]  ;;  %v218_v22 = vld [vmem:[%s4717_s0 + $0x620] sm:$0xff] }
  0x78   :  { %964 = vmatmul.mubr.f32.gmra.mrb[42].mxu0 %v106_v30  ;;  %2767 = vmatprep.subr.bf16.mxu1 %v2766_v26  ;;  %v234_v26 = vld [vmem:[%s4717_s0 + $0x6a0] sm:$0xff] }
  0x79   :  { %968 = vmatprep.mubr.f32.mxu0 %v123_v34  ;;  %2737 = vmatpush3.bf16.msra.mxu0 %v2736_v36  ;;  %v250_v30 = vld [vmem:[%s4717_s0 + $0x720] sm:$0xff]  ;;  %v31_v36 = vld [vmem:[%s4717_s0 + $0x48] sm:$0xff] }
  0x7a   :  { %1109 = vmatmul.mubr.f32.gmra.mrb[42].mxu1 %v108_v33  ;;  %2739 = vmatprep.subr.bf16.mxu0 %v2738_v38  ;;  %v269_v33 = vld [vmem:[%s4717_s0 + $0x7b8] sm:$0xff]  ;;  %v266_v34 = vld [vmem:[%s4717_s0 + $0x7a0] sm:$0xff]  ;;  %v471_v38 = vld [vmem:[%s4718_s1 + $0x608] sm:$0xff] }
  0x7b   :  { %1113 = vmatprep.mubr.f32.mxu1 %v125_v35  ;;  %2769 = vmatpush3.bf16.msra.mxu1 %v2768_v37  ;;  %v268_v35 = vld [vmem:[%s4717_s0 + $0x7b0] sm:$0xff]  ;;  %v470_v37 = vld [vmem:[%s4718_s1 + $0x600] sm:$0xff] }
  0x7c   :  { %969 = vmatmul.mubr.f32.gmra.mrb[44].mxu0 %v122_v46  ;;  %2771 = vmatprep.subr.bf16.mxu1 %v2770_v42  ;;  %v488_v42 = vld [vmem:[%s4718_s1 + $0x690] sm:$0xff]  ;;  %v2780_v45 = vpack.c.bf16 %v471_v38, %v470_v37  ;;  %v46_v57 = vld [vmem:[%s4717_s0 + $0xc0] sm:$0xff] }
  0x7d   :  { %973 = vmatprep.mubr.f32.mxu0 %v139_v50  ;;  %2741 = vmatpush3.bf16.msra.mxu0 %v2740_v52  ;;  %v32_v46 = vld [vmem:[%s4717_s0 + $0x50] sm:$0xff]  ;;  %v2782_v50 = vpack.c.bf16 %v489_v43, %v488_v42  ;;  %v473_v52 = vld [vmem:[%s4718_s1 + $0x618] sm:$0xff] }
  0x7e   :  { %1114 = vmatmul.mubr.f32.gmra.mrb[44].mxu1 %v124_v49  ;;  %2743 = vmatprep.subr.bf16.mxu0 %v2742_v54  ;;  %v2811_v49 = vpack.c.bf16 %v503_v41, %v502_v40  ;;  %v505_v54 = vld [vmem:[%s4718_s1 + $0x718] sm:$0xff] }
  0x7f   :  { %1118 = vmatprep.mubr.f32.mxu1 %v141_v51  ;;  %2773 = vmatpush3.bf16.msra.mxu1 %v2772_v53  ;;  %v472_v51 = vld [vmem:[%s4718_s1 + $0x610] sm:$0xff] }
  0x80   :  { %974 = vmatmul.mubr.f32.gmra.mrb[46].mxu0 %v138_v62  ;;  %2775 = vmatprep.subr.bf16.mxu1 %v2774_v58  ;;  %v504_v53 = vld [vmem:[%s4718_s1 + $0x710] sm:$0xff]  ;;  %v2784_v61 = vpack.c.bf16 %v473_v52, %v472_v51 }
  0x81   :  { %978 = vmatprep.mubr.f32.mxu0 %v155_v0  ;;  %2745 = vmatpush3.bf16.msra.mxu0 %v2744_v1  ;;  %v48_v58 = vld [vmem:[%s4717_s0 + $0xd0] sm:$0xff]  ;;  %v2814_v62 = vpack.c.bf16 %v505_v54, %v504_v53  ;;  %v506_v0 = vld [vmem:[%s4718_s1 + $0x720] sm:$0xff] }
  0x82   :  { %1119 = vmatmul.mubr.f32.gmra.mrb[46].mxu1 %v140_v63  ;;  %2779 = vmatprep.subr.bf16.mxu0 %v2778_v4  ;;  %v2786_v63 = vpack.c.bf16 %v491_v56, %v490_v55  ;;  %v474_v1 = vld [vmem:[%s4718_s1 + $0x620] sm:$0xff]  ;;  %v492_v4 = vld [vmem:[%s4718_s1 + $0x6b0] sm:$0xff] }
  0x83   :  { %1123 = vmatprep.mubr.f32.mxu1 %v157_v2  ;;  %2777 = vmatpush3.bf16.msra.mxu1 %v2776_v3  ;;  %v475_v2 = vld [vmem:[%s4718_s1 + $0x628] sm:$0xff] }
  0x84   :  { %979 = vmatmul.mubr.f32.gmra.mrb[48].mxu0 %v154_v5  ;;  %2810 = vmatprep.subr.bf16.mxu1 %v2875_v9  ;;  %v507_v3 = vld [vmem:[%s4718_s1 + $0x728] sm:$0xff]  ;;  %v493_v5 = vld [vmem:[%s4718_s1 + $0x6b8] sm:$0xff] }
  0x85   :  { %983 = vmatprep.mubr.f32.mxu0 %v171_v7  ;;  %v64_v7 = vld [vmem:[%s4717_s0 + $0x150] sm:$0xff] }
  0x86   :  { %1124 = vmatmul.mubr.f32.gmra.mrb[48].mxu1 %v156_v6  ;;  %v62_v6 = vld [vmem:[%s4717_s0 + $0x140] sm:$0xff] }
  0x87   :  { %1128 = vmatprep.mubr.f32.mxu1 %v173_v8  ;;  %v79_v8 = vld [vmem:[%s4717_s0 + $0x1c8] sm:$0xff] }
  0x88   :  { %984 = vmatmul.mubr.f32.gmra.mrb[50].mxu0 %v170_v10  ;;  %v81_v10 = vld [vmem:[%s4717_s0 + $0x1d8] sm:$0xff] }
  0x89   :  { %988 = vmatprep.mubr.f32.mxu0 %v187_v12 }
  0x8a   :  { %1129 = vmatmul.mubr.f32.gmra.mrb[50].mxu1 %v172_v11  ;;  %v2788_v11 = vpack.c.bf16 %v475_v2, %v474_v1 }
  0x8b   :  { %1133 = vmatprep.mubr.f32.mxu1 %v189_v13 }
  0x8c   :  { %989 = vmatmul.mubr.f32.gmra.mrb[52].mxu0 %v186_v14 }
  0x8d   :  { %993 = vmatprep.mubr.f32.mxu0 %v203_v16 }
  0x8e   :  { %1134 = vmatmul.mubr.f32.gmra.mrb[52].mxu1 %v188_v15 }
  0x8f   :  { %1138 = vmatprep.mubr.f32.mxu1 %v205_v17 }
  0x90   :  { %994 = vmatmul.mubr.f32.gmra.mrb[54].mxu0 %v202_v18 }
  0x91   :  { %998 = vmatprep.mubr.f32.mxu0 %v219_v20 }
  0x92   :  { %1139 = vmatmul.mubr.f32.gmra.mrb[54].mxu1 %v204_v19 }
  0x93   :  { %1143 = vmatprep.mubr.f32.mxu1 %v221_v21 }
  0x94   :  { %999 = vmatmul.mubr.f32.gmra.mrb[56].mxu0 %v218_v22 }
  0x95   :  { %1003 = vmatprep.mubr.f32.mxu0 %v235_v24 }
  0x96   :  { %1144 = vmatmul.mubr.f32.gmra.mrb[56].mxu1 %v220_v23 }
  0x97   :  { %1148 = vmatprep.mubr.f32.mxu1 %v237_v25 }
  0x98   :  { %1004 = vmatmul.mubr.f32.gmra.mrb[58].mxu0 %v234_v26 }
  0x99   :  { %1008 = vmatprep.mubr.f32.mxu0 %v251_v28 }
  0x9a   :  { %1149 = vmatmul.mubr.f32.gmra.mrb[58].mxu1 %v236_v27 }
  0x9b   :  { %1153 = vmatprep.mubr.f32.mxu1 %v253_v29 }
  0x9c   :  { %1009 = vmatmul.mubr.f32.gmra.mrb[60].mxu0 %v250_v30 }
  0x9d   :  { %1013 = vmatprep.mubr.f32.mxu0 %v267_v32 }
  0x9e   :  { %1154 = vmatmul.mubr.f32.gmra.mrb[60].mxu1 %v252_v31 }
  0x9f   :  { %1158 = vmatprep.mubr.f32.mxu1 %v269_v33 }
  0xa0   :  { %1014 = vmatmul.mubr.f32.gmra.mrb[62].mxu0 %v266_v34 }
  0xa1   :  { %1228 = vmatprep.mubr.f32.mxu0 %v31_v36 }
  0xa2   :  { %1159 = vmatmul.mubr.f32.gmra.mrb[62].mxu1 %v268_v35 }
  0xa3   :  { %1373 = vmatprep.mubr.f32.mxu1 %v33_v39 }
  0xa4   :  { %1229 = vmatmul.mubr.f32.vlgmr.msra.gmra.mrb[64].mxu0 %v30_v44 }
  0xa5   :  { %2781 = vmatpush3.bf16.msra.mxu0 %v2780_v45  ;;  %1233 = vmatprep.mubr.f32.mxu0 %v47_v47 }
  0xa6   :  { %1374 = vmatmul.mubr.f32.vlgmr.msra.gmra.mrb[64].mxu1 %v32_v46  ;;  %2783 = vmatprep.subr.bf16.mxu0 %v2782_v50 }
  0xa7   :  { %1378 = vmatprep.mubr.f32.mxu1 %v49_v48  ;;  %2812 = vmatpush1.bf16.msra.mxu1 %v2811_v49 }
  0xa8   :  { %1234 = vmatmul.mubr.f32.gmra.mrb[66].mxu0 %v46_v57  ;;  %2813 = vmatprep.subr.bf16.mxu1 %v2875_v9 }
  0xa9   :  { %1238 = vmatprep.mubr.f32.mxu0 %v63_v59  ;;  %2785 = vmatpush3.bf16.msra.mxu0 %v2784_v61 }
  0xaa   :  { %1379 = vmatmul.mubr.f32.gmra.mrb[66].mxu1 %v48_v58 }
  0xab   :  { %1383 = vmatprep.mubr.f32.mxu1 %v65_v60 }
  0xac   :  { %11 = vsyncpa [#allocation4], 0  ;;  %2815 = vmatpush1.bf16.msra.mxu1 %v2814_v62  ;;  %2787 = vmatprep.subr.bf16.mxu0 %v2786_v63  ;;  %v2817_v12 = vpack.c.bf16 %v507_v3, %v506_v0  ;;  %v508_v13 = vld [vmem:[%s4718_s1 + $0x730] sm:$0xff]  ;;  %v2790_v14 = vpack.c.bf16 %v493_v5, %v492_v4  ;;  %v477_v16 = vld [vmem:[%s4718_s1 + $0x638] sm:$0xff]  ;;  %vm535_vm0 = vcmask 654336  }
  0xad   :  { %v476_v15 = vld [vmem:[%s4718_s1 + $0x630] sm:$0xff]  ;;  %1239 = vmatmul.mubr.f32.gmra.mrb[68].mxu0 %v62_v6  ;;  %2816 = vmatprep.subr.bf16.mxu1 %v2875_v9  ;;  %v509_v17 = vld [vmem:[%s4718_s1 + $0x738] sm:$0xff]  ;;  %v494_v18 = vld [vmem:[%s4718_s1 + $0x6c0] sm:$0xff] }
  0xae   :  { %v495_v19 = vld [vmem:[%s4718_s1 + $0x6c8] sm:$0xff]  ;;  %1384 = vmatmul.mubr.f32.gmra.mrb[68].mxu1 %v64_v7  ;;  %1243 = vmatprep.mubr.f32.mxu0 %v79_v8  ;;  %v78_v20 = vld [vmem:[%s4717_s0 + $0x1c0] sm:$0xff]  ;;  %v80_v21 = vld [vmem:[%s4717_s0 + $0x1d0] sm:$0xff]  ;;  %v2792_v24 = vpack.c.bf16 %v477_v16, %v476_v15  ;;  %v2820_v25 = vpack.c.bf16 %v509_v17, %v508_v13 }
  0xaf   :  { %1388 = vmatprep.mubr.f32.mxu1 %v81_v10  ;;  %v95_v22 = vld [vmem:[%s4717_s0 + $0x248] sm:$0xff]  ;;  %v97_v23 = vld [vmem:[%s4717_s0 + $0x258] sm:$0xff]  ;;  %2789 = vmatpush3.bf16.msra.mxu0 %v2788_v11  ;;  %v510_v26 = vld [vmem:[%s4718_s1 + $0x740] sm:$0xff]  ;;  %v2794_v27 = vpack.c.bf16 %v495_v19, %v494_v18 }
  0xb0   :  { %2818 = vmatpush1.bf16.msra.mxu1 %v2817_v12  ;;  %2791 = vmatprep.subr.bf16.mxu0 %v2790_v14  ;;  %v478_v28 = vld [vmem:[%s4718_s1 + $0x640] sm:$0xff]  ;;  %v479_v29 = vld [vmem:[%s4718_s1 + $0x648] sm:$0xff]  ;;  %v496_v31 = vld [vmem:[%s4718_s1 + $0x6d0] sm:$0xff] }
  0xb1   :  { %1244 = vmatmul.mubr.f32.gmra.mrb[70].mxu0 %v78_v20  ;;  %2819 = vmatprep.subr.bf16.mxu1 %v2875_v9  ;;  %v511_v30 = vld [vmem:[%s4718_s1 + $0x748] sm:$0xff]  ;;  %v497_v32 = vld [vmem:[%s4718_s1 + $0x6d8] sm:$0xff]  ;;  %v94_v33 = vld [vmem:[%s4717_s0 + $0x240] sm:$0xff]  ;;  %v2796_v37 = vpack.c.bf16 %v479_v29, %v478_v28 }
  0xb2   :  { %1389 = vmatmul.mubr.f32.gmra.mrb[70].mxu1 %v80_v21  ;;  %1248 = vmatprep.mubr.f32.mxu0 %v95_v22  ;;  %v96_v34 = vld [vmem:[%s4717_s0 + $0x250] sm:$0xff]  ;;  %v111_v35 = vld [vmem:[%s4717_s0 + $0x2c8] sm:$0xff]  ;;  %v113_v36 = vld [vmem:[%s4717_s0 + $0x2d8] sm:$0xff]  ;;  %v2823_v38 = vpack.c.bf16 %v511_v30, %v510_v26  ;;  %v2798_v40 = vpack.c.bf16 %v497_v32, %v496_v31 }
  0xb3   :  { %1393 = vmatprep.mubr.f32.mxu1 %v97_v23  ;;  %2793 = vmatpush3.bf16.msra.mxu0 %v2792_v24  ;;  %v512_v39 = vld [vmem:[%s4718_s1 + $0x750] sm:$0xff]  ;;  %v481_v42 = vld [vmem:[%s4718_s1 + $0x658] sm:$0xff]  ;;  %v498_v44 = vld [vmem:[%s4718_s1 + $0x6e0] sm:$0xff] }
  0xb4   :  { %2821 = vmatpush1.bf16.msra.mxu1 %v2820_v25  ;;  %2795 = vmatprep.subr.bf16.mxu0 %v2794_v27  ;;  %v480_v41 = vld [vmem:[%s4718_s1 + $0x650] sm:$0xff]  ;;  %v513_v43 = vld [vmem:[%s4718_s1 + $0x758] sm:$0xff]  ;;  %v499_v45 = vld [vmem:[%s4718_s1 + $0x6e8] sm:$0xff] }
  0xb5   :  { %1249 = vmatmul.mubr.f32.gmra.mrb[72].mxu0 %v94_v33  ;;  %2822 = vmatprep.subr.bf16.mxu1 %v2875_v9  ;;  %v110_v46 = vld [vmem:[%s4717_s0 + $0x2c0] sm:$0xff]  ;;  %v112_v47 = vld [vmem:[%s4717_s0 + $0x2d0] sm:$0xff]  ;;  %v127_v48 = vld [vmem:[%s4717_s0 + $0x348] sm:$0xff]  ;;  %v2800_v50 = vpack.c.bf16 %v481_v42, %v480_v41  ;;  %v2826_v51 = vpack.c.bf16 %v513_v43, %v512_v39  ;;  %v2802_v53 = vpack.c.bf16 %v499_v45, %v498_v44 }
  0xb6   :  { %1394 = vmatmul.mubr.f32.gmra.mrb[72].mxu1 %v96_v34  ;;  %1253 = vmatprep.mubr.f32.mxu0 %v111_v35  ;;  %v129_v49 = vld [vmem:[%s4717_s0 + $0x358] sm:$0xff]  ;;  %v514_v52 = vld [vmem:[%s4718_s1 + $0x760] sm:$0xff]  ;;  %v483_v55 = vld [vmem:[%s4718_s1 + $0x668] sm:$0xff] }
  0xb7   :  { %1398 = vmatprep.mubr.f32.mxu1 %v113_v36  ;;  %2797 = vmatpush3.bf16.msra.mxu0 %v2796_v37  ;;  %v482_v54 = vld [vmem:[%s4718_s1 + $0x660] sm:$0xff]  ;;  %v515_v56 = vld [vmem:[%s4718_s1 + $0x768] sm:$0xff]  ;;  %v500_v57 = vld [vmem:[%s4718_s1 + $0x6f0] sm:$0xff] }
  0xb8   :  { %2824 = vmatpush1.bf16.msra.mxu1 %v2823_v38  ;;  %2799 = vmatprep.subr.bf16.mxu0 %v2798_v40  ;;  %v501_v58 = vld [vmem:[%s4718_s1 + $0x6f8] sm:$0xff]  ;;  %v126_v59 = vld [vmem:[%s4717_s0 + $0x340] sm:$0xff]  ;;  %v128_v60 = vld [vmem:[%s4717_s0 + $0x350] sm:$0xff]  ;;  %v2804_v62 = vpack.c.bf16 %v483_v55, %v482_v54  ;;  %v2829_v0 = vpack.c.bf16 %v515_v56, %v514_v52 }
  0xb9   :  { %1254 = vmatmul.mubr.f32.gmra.mrb[74].mxu0 %v110_v46  ;;  %2825 = vmatprep.subr.bf16.mxu1 %v2875_v9  ;;  %v143_v61 = vld [vmem:[%s4717_s0 + $0x3c8] sm:$0xff]  ;;  %v145_v63 = vld [vmem:[%s4717_s0 + $0x3d8] sm:$0xff]  ;;  %v2806_v1 = vpack.c.bf16 %v501_v58, %v500_v57  ;;  %v484_v2 = vld [vmem:[%s4718_s1 + $0x670] sm:$0xff] }
  0xba   :  { %1399 = vmatmul.mubr.f32.gmra.mrb[74].mxu1 %v112_v47  ;;  %1258 = vmatprep.mubr.f32.mxu0 %v127_v48  ;;  %v485_v3 = vld [vmem:[%s4718_s1 + $0x678] sm:$0xff]  ;;  %v516_v4 = vld [vmem:[%s4718_s1 + $0x770] sm:$0xff]  ;;  %v142_v6 = vld [vmem:[%s4717_s0 + $0x3c0] sm:$0xff] }
  0xbb   :  { %1403 = vmatprep.mubr.f32.mxu1 %v129_v49  ;;  %2801 = vmatpush3.bf16.msra.mxu0 %v2800_v50  ;;  %v517_v5 = vld [vmem:[%s4718_s1 + $0x778] sm:$0xff]  ;;  %v144_v7 = vld [vmem:[%s4717_s0 + $0x3d0] sm:$0xff]  ;;  %v159_v8 = vld [vmem:[%s4717_s0 + $0x448] sm:$0xff]  ;;  %v2808_v10 = vpack.c.bf16 %v485_v3, %v484_v2 }
  0xbc   :  { %2827 = vmatpush1.bf16.msra.mxu1 %v2826_v51  ;;  %2803 = vmatprep.subr.bf16.mxu0 %v2802_v53  ;;  %v161_v11 = vld [vmem:[%s4717_s0 + $0x458] sm:$0xff]  ;;  %v2832_v12 = vpack.c.bf16 %v517_v5, %v516_v4  ;;  %v518_v13 = vld [vmem:[%s4718_s1 + $0x780] sm:$0xff]  ;;  %v519_v14 = vld [vmem:[%s4718_s1 + $0x788] sm:$0xff] }
  0xbd   :  { %1259 = vmatmul.mubr.f32.gmra.mrb[76].mxu0 %v126_v59  ;;  %2828 = vmatprep.subr.bf16.mxu1 %v2875_v9  ;;  %v158_v15 = vld [vmem:[%s4717_s0 + $0x440] sm:$0xff]  ;;  %v160_v16 = vld [vmem:[%s4717_s0 + $0x450] sm:$0xff]  ;;  %v175_v17 = vld [vmem:[%s4717_s0 + $0x4c8] sm:$0xff]  ;;  %v2835_v19 = vpack.c.bf16 %v519_v14, %v518_v13 }
  0xbe   :  { %1404 = vmatmul.mubr.f32.gmra.mrb[76].mxu1 %v128_v60  ;;  %1263 = vmatprep.mubr.f32.mxu0 %v143_v61  ;;  %v177_v18 = vld [vmem:[%s4717_s0 + $0x4d8] sm:$0xff]  ;;  %v520_v20 = vld [vmem:[%s4718_s1 + $0x790] sm:$0xff]  ;;  %v174_v22 = vld [vmem:[%s4717_s0 + $0x4c0] sm:$0xff] }
  0xbf   :  { %1408 = vmatprep.mubr.f32.mxu1 %v145_v63  ;;  %2805 = vmatpush3.bf16.msra.mxu0 %v2804_v62  ;;  %v521_v21 = vld [vmem:[%s4718_s1 + $0x798] sm:$0xff]  ;;  %v176_v23 = vld [vmem:[%s4717_s0 + $0x4d0] sm:$0xff]  ;;  %v191_v24 = vld [vmem:[%s4717_s0 + $0x548] sm:$0xff] }
  0xc0   :  { %2830 = vmatpush1.bf16.msra.mxu1 %v2829_v0  ;;  %2807 = vmatprep.subr.bf16.mxu0 %v2806_v1  ;;  %v193_v25 = vld [vmem:[%s4717_s0 + $0x558] sm:$0xff]  ;;  %v2838_v26 = vpack.c.bf16 %v521_v21, %v520_v20  ;;  %v522_v27 = vld [vmem:[%s4718_s1 + $0x7a0] sm:$0xff]  ;;  %v523_v28 = vld [vmem:[%s4718_s1 + $0x7a8] sm:$0xff] }
  0xc1   :  { %1264 = vmatmul.mubr.f32.gmra.mrb[78].mxu0 %v142_v6  ;;  %2831 = vmatprep.subr.bf16.mxu1 %v2875_v9  ;;  %v190_v29 = vld [vmem:[%s4717_s0 + $0x540] sm:$0xff]  ;;  %v192_v30 = vld [vmem:[%s4717_s0 + $0x550] sm:$0xff]  ;;  %v207_v31 = vld [vmem:[%s4717_s0 + $0x5c8] sm:$0xff]  ;;  %v2841_v33 = vpack.c.bf16 %v523_v28, %v522_v27 }
  0xc2   :  { %1409 = vmatmul.mubr.f32.gmra.mrb[78].mxu1 %v144_v7  ;;  %1268 = vmatprep.mubr.f32.mxu0 %v159_v8  ;;  %v209_v32 = vld [vmem:[%s4717_s0 + $0x5d8] sm:$0xff]  ;;  %v524_v34 = vld [vmem:[%s4718_s1 + $0x7b0] sm:$0xff]  ;;  %v206_v36 = vld [vmem:[%s4717_s0 + $0x5c0] sm:$0xff] }
  0xc3   :  { %1413 = vmatprep.mubr.f32.mxu1 %v161_v11  ;;  %2809 = vmatpush3.bf16.msra.mxu0 %v2808_v10  ;;  %v525_v35 = vld [vmem:[%s4718_s1 + $0x7b8] sm:$0xff]  ;;  %v208_v37 = vld [vmem:[%s4717_s0 + $0x5d0] sm:$0xff]  ;;  %v223_v38 = vld [vmem:[%s4717_s0 + $0x648] sm:$0xff] }
  0xc4   :  { %2833 = vmatpush1.bf16.msra.mxu1 %v2832_v12  ;;  %v225_v39 = vld [vmem:[%s4717_s0 + $0x658] sm:$0xff]  ;;  %v2844_v40 = vpack.c.bf16 %v525_v35, %v524_v34  ;;  %v526_v41 = vld [vmem:[%s4718_s1 + $0x7c0] sm:$0xff]  ;;  %v527_v42 = vld [vmem:[%s4718_s1 + $0x7c8] sm:$0xff] }
  0xc5   :  { %1269 = vmatmul.mubr.f32.gmra.mrb[80].mxu0 %v158_v15  ;;  %2834 = vmatprep.subr.bf16.mxu1 %v2875_v9  ;;  %v222_v43 = vld [vmem:[%s4717_s0 + $0x640] sm:$0xff]  ;;  %v224_v44 = vld [vmem:[%s4717_s0 + $0x650] sm:$0xff]  ;;  %v239_v45 = vld [vmem:[%s4717_s0 + $0x6c8] sm:$0xff]  ;;  %v2847_v47 = vpack.c.bf16 %v527_v42, %v526_v41 }
  0xc6   :  { %1414 = vmatmul.mubr.f32.gmra.mrb[80].mxu1 %v160_v16  ;;  %1273 = vmatprep.mubr.f32.mxu0 %v175_v17  ;;  %v241_v46 = vld [vmem:[%s4717_s0 + $0x6d8] sm:$0xff]  ;;  %v238_v48 = vld [vmem:[%s4717_s0 + $0x6c0] sm:$0xff]  ;;  %v240_v49 = vld [vmem:[%s4717_s0 + $0x6d0] sm:$0xff] }
  0xc7   :  { %1418 = vmatprep.mubr.f32.mxu1 %v177_v18  ;;  %v255_v50 = vld [vmem:[%s4717_s0 + $0x748] sm:$0xff]  ;;  %v257_v51 = vld [vmem:[%s4717_s0 + $0x758] sm:$0xff]  ;;  %v256_v52 = vld [vmem:[%s4717_s0 + $0x750] sm:$0xff] }
  0xc8   :  { %2836 = vmatpush1.bf16.msra.mxu1 %v2835_v19  ;;  %v271_v53 = vld [vmem:[%s4717_s0 + $0x7c8] sm:$0xff]  ;;  %v273_v54 = vld [vmem:[%s4717_s0 + $0x7d8] sm:$0xff]  ;;  %v270_v55 = vld [vmem:[%s4717_s0 + $0x7c0] sm:$0xff] }
  0xc9   :  { %1274 = vmatmul.mubr.f32.gmra.mrb[82].mxu0 %v174_v22  ;;  %2837 = vmatprep.subr.bf16.mxu1 %v2875_v9  ;;  %v272_v56 = vld [vmem:[%s4717_s0 + $0x7d0] sm:$0xff]  ;;  %v35_v57 = vld [vmem:[%s4717_s0 + $0x68] sm:$0xff]  ;;  %v37_v58 = vld [vmem:[%s4717_s0 + $0x78] sm:$0xff] }
  0xca   :  { %1419 = vmatmul.mubr.f32.gmra.mrb[82].mxu1 %v176_v23  ;;  %1278 = vmatprep.mubr.f32.mxu0 %v191_v24  ;;  %v34_v59 = vld [vmem:[%s4717_s0 + $0x60] sm:$0xff]  ;;  %v51_v60 = vld [vmem:[%s4717_s0 + $0xe8] sm:$0xff]  ;;  %v36_v61 = vld [vmem:[%s4717_s0 + $0x70] sm:$0xff] }
  0xcb   :  { %1423 = vmatprep.mubr.f32.mxu1 %v193_v25  ;;  %v53_v62 = vld [vmem:[%s4717_s0 + $0xf8] sm:$0xff]  ;;  %v50_v63 = vld [vmem:[%s4717_s0 + $0xe0] sm:$0xff]  ;;  %v67_v0 = vld [vmem:[%s4717_s0 + $0x168] sm:$0xff] }
  0xcc   :  { %2839 = vmatpush1.bf16.msra.mxu1 %v2838_v26  ;;  %v52_v1 = vld [vmem:[%s4717_s0 + $0xf0] sm:$0xff]  ;;  %v69_v2 = vld [vmem:[%s4717_s0 + $0x178] sm:$0xff]  ;;  %v66_v3 = vld [vmem:[%s4717_s0 + $0x160] sm:$0xff] }
  0xcd   :  { %1279 = vmatmul.mubr.f32.gmra.mrb[84].mxu0 %v190_v29  ;;  %2840 = vmatprep.subr.bf16.mxu1 %v2875_v9  ;;  %v83_v4 = vld [vmem:[%s4717_s0 + $0x1e8] sm:$0xff]  ;;  %v68_v5 = vld [vmem:[%s4717_s0 + $0x170] sm:$0xff]  ;;  %v85_v6 = vld [vmem:[%s4717_s0 + $0x1f8] sm:$0xff] }
  0xce   :  { %1424 = vmatmul.mubr.f32.gmra.mrb[84].mxu1 %v192_v30  ;;  %1283 = vmatprep.mubr.f32.mxu0 %v207_v31  ;;  %v82_v7 = vld [vmem:[%s4717_s0 + $0x1e0] sm:$0xff]  ;;  %v99_v8 = vld [vmem:[%s4717_s0 + $0x268] sm:$0xff]  ;;  %v84_v10 = vld [vmem:[%s4717_s0 + $0x1f0] sm:$0xff] }
  0xcf   :  { %1428 = vmatprep.mubr.f32.mxu1 %v209_v32  ;;  %v101_v11 = vld [vmem:[%s4717_s0 + $0x278] sm:$0xff]  ;;  %v98_v12 = vld [vmem:[%s4717_s0 + $0x260] sm:$0xff]  ;;  %v115_v13 = vld [vmem:[%s4717_s0 + $0x2e8] sm:$0xff] }
  0xd0   :  { %2842 = vmatpush1.bf16.msra.mxu1 %v2841_v33  ;;  %v100_v14 = vld [vmem:[%s4717_s0 + $0x270] sm:$0xff]  ;;  %v117_v15 = vld [vmem:[%s4717_s0 + $0x2f8] sm:$0xff]  ;;  %v114_v16 = vld [vmem:[%s4717_s0 + $0x2e0] sm:$0xff] }
  0xd1   :  { %1284 = vmatmul.mubr.f32.gmra.mrb[86].mxu0 %v206_v36  ;;  %2843 = vmatprep.subr.bf16.mxu1 %v2875_v9  ;;  %v131_v17 = vld [vmem:[%s4717_s0 + $0x368] sm:$0xff]  ;;  %v116_v18 = vld [vmem:[%s4717_s0 + $0x2f0] sm:$0xff]  ;;  %v133_v20 = vld [vmem:[%s4717_s0 + $0x378] sm:$0xff] }
  0xd2   :  { %1429 = vmatmul.mubr.f32.gmra.mrb[86].mxu1 %v208_v37  ;;  %1288 = vmatprep.mubr.f32.mxu0 %v223_v38  ;;  %v4333_v21 = vld [vmem:[%s4719_s2] ss:$0 sm:$0xff]  ;;  %v147_v28 = vld [vmem:[%s4717_s0 + $0x3e8] sm:$0xff]  ;;  %v132_v29 = vld [vmem:[%s4717_s0 + $0x370] sm:$0xff] }
  0xd3   :  { %1433 = vmatprep.mubr.f32.mxu1 %v225_v39  ;;  %v130_v26 = vld [vmem:[%s4717_s0 + $0x360] sm:$0xff]  ;;  %v149_v32 = vld [vmem:[%s4717_s0 + $0x3f8] sm:$0xff]  ;;  %v148_v41 = vld [vmem:[%s4717_s0 + $0x3f0] sm:$0xff] }
  0xd4   :  { %2845 = vmatpush1.bf16.msra.mxu1 %v2844_v40  ;;  %v146_v38 = vld [vmem:[%s4717_s0 + $0x3e0] sm:$0xff]  ;;  %v163_v40 = vld [vmem:[%s4717_s0 + $0x468] sm:$0xff] }
  0xd5   :  { %1289 = vmatmul.mubr.f32.gmra.mrb[88].mxu0 %v222_v43  ;;  %2846 = vmatprep.subr.bf16.mxu1 %v2875_v9  ;;  %v254_v9 = vld [vmem:[%s4717_s0 + $0x740] sm:$0xff] }
  0xd6   :  { %1434 = vmatmul.mubr.f32.gmra.mrb[88].mxu1 %v224_v44  ;;  %1293 = vmatprep.mubr.f32.mxu0 %v239_v45  ;;  %v165_v44 = vld [vmem:[%s4717_s0 + $0x478] sm:$0xff] }
  0xd7   :  { %1438 = vmatprep.mubr.f32.mxu1 %v241_v46 }
  0xd8   :  { %2848 = vmatpush1.bf16.msra.mxu1 %v2847_v47 }
  0xd9   :  { %1294 = vmatmul.mubr.f32.gmra.mrb[90].mxu0 %v238_v48 }
  0xda   :  { %1439 = vmatmul.mubr.f32.gmra.mrb[90].mxu1 %v240_v49  ;;  %1298 = vmatprep.mubr.f32.mxu0 %v255_v50  ;;  %v162_v50 = vld [vmem:[%s4717_s0 + $0x460] sm:$0xff] }
  0xdb   :  { %1443 = vmatprep.mubr.f32.mxu1 %v257_v51 }
  0xdd   :  { %1299 = vmatmul.mubr.f32.gmra.mrb[92].mxu0 %v254_v9  ;;  %v179_v9 = vld [vmem:[%s4717_s0 + $0x4e8] sm:$0xff] }
  0xde   :  { %1444 = vmatmul.mubr.f32.gmra.mrb[92].mxu1 %v256_v52  ;;  %1303 = vmatprep.mubr.f32.mxu0 %v271_v53  ;;  %v164_v52 = vld [vmem:[%s4717_s0 + $0x470] sm:$0xff] }
  0xdf   :  { %1448 = vmatprep.mubr.f32.mxu1 %v273_v54 }
  0xe1   :  { %1304 = vmatmul.mubr.f32.gmra.mrb[94].mxu0 %v270_v55  ;;  %v181_v55 = vld [vmem:[%s4717_s0 + $0x4f8] sm:$0xff] }
  0xe2   :  { %1449 = vmatmul.mubr.f32.gmra.mrb[94].mxu1 %v272_v56  ;;  %1518 = vmatprep.mubr.f32.mxu0 %v35_v57 }
  0xe3   :  { %2009 = vmatprep.mubr.msk.f32.mxu1 %vm535_vm0, %v37_v58 }
  0xe5   :  { %1519 = vmatmul.mubr.f32.vlgmr.msra.gmra.mrb[96].mxu0 %v34_v59 }
  0xe6   :  { %1523 = vmatprep.mubr.f32.mxu0 %v51_v60  ;;  %1664 = vmatmul.mubr.f32.vlgmr.msra.gmra.mrb[96].mxu1 %v36_v61  ;;  %v178_v61 = vld [vmem:[%s4717_s0 + $0x4e0] sm:$0xff] }
  0xe7   :  { %2010 = vmatprep.mubr.msk.f32.mxu1 %vm535_vm0, %v53_v62 }
  0xe9   :  { %1524 = vmatmul.mubr.f32.gmra.mrb[98].mxu0 %v50_v63  ;;  %v195_v63 = vld [vmem:[%s4717_s0 + $0x568] sm:$0xff] }
  0xea   :  { %1528 = vmatprep.mubr.f32.mxu0 %v67_v0  ;;  %1669 = vmatmul.mubr.f32.gmra.mrb[98].mxu1 %v52_v1  ;;  %v180_v0 = vld [vmem:[%s4717_s0 + $0x4f0] sm:$0xff] }
  0xeb   :  { %2011 = vmatprep.mubr.msk.f32.mxu1 %vm535_vm0, %v69_v2 }
  0xed   :  { %1529 = vmatmul.mubr.f32.gmra.mrb[100].mxu0 %v66_v3  ;;  %v197_v3 = vld [vmem:[%s4717_s0 + $0x578] sm:$0xff] }
  0xee   :  { %1533 = vmatprep.mubr.f32.mxu0 %v83_v4  ;;  %1674 = vmatmul.mubr.f32.gmra.mrb[100].mxu1 %v68_v5 }
  0xef   :  { %2012 = vmatprep.mubr.msk.f32.mxu1 %vm535_vm0, %v85_v6 }
  0xf1   :  { %1534 = vmatmul.mubr.f32.gmra.mrb[102].mxu0 %v82_v7 }
  0xf2   :  { %1538 = vmatprep.mubr.f32.mxu0 %v99_v8  ;;  %1679 = vmatmul.mubr.f32.gmra.mrb[102].mxu1 %v84_v10  ;;  %v194_v10 = vld [vmem:[%s4717_s0 + $0x560] sm:$0xff] }
  0xf3   :  { %2013 = vmatprep.mubr.msk.f32.mxu1 %vm535_vm0, %v101_v11 }
  0xf5   :  { %1539 = vmatmul.mubr.f32.gmra.mrb[104].mxu0 %v98_v12  ;;  %v211_v12 = vld [vmem:[%s4717_s0 + $0x5e8] sm:$0xff] }
  0xf6   :  { %1543 = vmatprep.mubr.f32.mxu0 %v115_v13  ;;  %1684 = vmatmul.mubr.f32.gmra.mrb[104].mxu1 %v100_v14  ;;  %v196_v13 = vld [vmem:[%s4717_s0 + $0x570] sm:$0xff] }
  0xf7   :  { %2014 = vmatprep.mubr.msk.f32.mxu1 %vm535_vm0, %v117_v15  ;;  %v2058_v19 = vpop.f32.mrb[0].mxu0 }
  0xf8   :  { %v2059_v22 = vpop.f32.mrb[1].mxu0 }
  0xf9   :  { %1544 = vmatmul.mubr.f32.gmra.mrb[106].mxu0 %v114_v16  ;;  %v2138_v23 = vpop.f32.mrb[0].mxu1  ;;  %v2060_v24 = vadd.f32 %v2059_v22, %v2058_v19  ;;  %v213_v16 = vld [vmem:[%s4717_s0 + $0x5f8] sm:$0xff] }
  0xfa   :  { %v2139_v25 = vpop.f32.mrb[1].mxu1  ;;  %1548 = vmatprep.mubr.f32.mxu0 %v131_v17  ;;  %1689 = vmatmul.mubr.f32.gmra.mrb[106].mxu1 %v116_v18 }
  0xfb   :  { %v2140_v27 = vadd.f32 %v2139_v25, %v2138_v23  ;;  %2015 = vmatprep.mubr.msk.f32.mxu1 %vm535_vm0, %v133_v20  ;;  %v651_v30 = vadd.f32 %v2060_v24, %v4333_v21  ;;  %v2061_v31 = vpop.f32.mrb[2].mxu0  ;;  %v210_v23 = vld [vmem:[%s4717_s0 + $0x5e0] sm:$0xff]  ;;  %v227_v25 = vld [vmem:[%s4717_s0 + $0x668] sm:$0xff] }
  0xfc   :  { %v2062_v33 = vpop.f32.mrb[3].mxu0 }
  0xfd   :  { %1549 = vmatmul.mubr.f32.gmra.mrb[108].mxu0 %v130_v26  ;;  %v2141_v34 = vpop.f32.mrb[2].mxu1  ;;  %v4349_v35 = vadd.f32 %v2140_v27, %v651_v30  ;;  %v2063_v36 = vadd.f32 %v2062_v33, %v2061_v31  ;;  %v212_v26 = vld [vmem:[%s4717_s0 + $0x5f0] sm:$0xff] }
  0xfe   :  { %v2142_v37 = vpop.f32.mrb[3].mxu1  ;;  %1553 = vmatprep.mubr.f32.mxu0 %v147_v28  ;;  %1694 = vmatmul.mubr.f32.gmra.mrb[108].mxu1 %v132_v29  ;;  %v229_v29 = vld [vmem:[%s4717_s0 + $0x678] sm:$0xff] }
  0xff   :  { %v2143_v39 = vadd.f32 %v2142_v37, %v2141_v34  ;;  %2016 = vmatprep.mubr.msk.f32.mxu1 %vm535_vm0, %v149_v32  ;;  %v656_v42 = vadd.f32 %v2063_v36, %v4333_v21  ;;  %v2064_v43 = vpop.f32.mrb[4].mxu0  ;;  %v226_v36 = vld [vmem:[%s4717_s0 + $0x660] sm:$0xff] }
 0x100   :  { %v2065_v45 = vpop.f32.mrb[5].mxu0 }
 0x101   :  { %1554 = vmatmul.mubr.f32.gmra.mrb[110].mxu0 %v146_v38  ;;  %v2144_v46 = vpop.f32.mrb[4].mxu1  ;;  %v4365_v47 = vadd.f32 %v2143_v39, %v656_v42  ;;  %v2066_v48 = vadd.f32 %v2065_v45, %v2064_v43  ;;  %v243_v38 = vld [vmem:[%s4717_s0 + $0x6e8] sm:$0xff]  ;;  %v228_v39 = vld [vmem:[%s4717_s0 + $0x670] sm:$0xff]  ;;  %v245_v42 = vld [vmem:[%s4717_s0 + $0x6f8] sm:$0xff] }
 0x102   :  { %v2145_v49 = vpop.f32.mrb[5].mxu1  ;;  %1558 = vmatprep.mubr.f32.mxu0 %v163_v40  ;;  %1699 = vmatmul.mubr.f32.gmra.mrb[110].mxu1 %v148_v41 }
 0x103   :  { %v2146_v51 = vadd.f32 %v2145_v49, %v2144_v46  ;;  %2017 = vmatprep.mubr.msk.f32.mxu1 %vm535_vm0, %v165_v44  ;;  %v661_v53 = vadd.f32 %v2066_v48, %v4333_v21  ;;  %v2067_v54 = vpop.f32.mrb[6].mxu0  ;;  %v242_v49 = vld [vmem:[%s4717_s0 + $0x6e0] sm:$0xff] }
 0x104   :  { %v2068_v56 = vpop.f32.mrb[7].mxu0 }
 0x105   :  { %1559 = vmatmul.mubr.f32.gmra.mrb[112].mxu0 %v162_v50  ;;  %v2147_v57 = vpop.f32.mrb[6].mxu1  ;;  %v4381_v58 = vadd.f32 %v2146_v51, %v661_v53  ;;  %v2069_v59 = vadd.f32 %v2068_v56, %v2067_v54  ;;  %v259_v51 = vld [vmem:[%s4717_s0 + $0x768] sm:$0xff]  ;;  %v261_v54 = vld [vmem:[%s4717_s0 + $0x778] sm:$0xff] }
 0x106   :  { %v2148_v60 = vpop.f32.mrb[7].mxu1  ;;  %1563 = vmatprep.mubr.f32.mxu0 %v179_v9  ;;  %1704 = vmatmul.mubr.f32.gmra.mrb[112].mxu1 %v164_v52  ;;  %v244_v9 = vld [vmem:[%s4717_s0 + $0x6f0] sm:$0xff] }
 0x107   :  { %v2149_v62 = vadd.f32 %v2148_v60, %v2147_v57  ;;  %2018 = vmatprep.mubr.msk.f32.mxu1 %vm535_vm0, %v181_v55  ;;  %v666_v1 = vadd.f32 %v2069_v59, %v4333_v21  ;;  %v2070_v2 = vpop.f32.mrb[8].mxu0 }
 0x108   :  { %v2071_v4 = vpop.f32.mrb[9].mxu0 }
 0x109   :  { %1564 = vmatmul.mubr.f32.gmra.mrb[114].mxu0 %v178_v61  ;;  %v2150_v5 = vpop.f32.mrb[8].mxu1  ;;  %v4397_v6 = vadd.f32 %v2149_v62, %v666_v1  ;;  %v2072_v7 = vadd.f32 %v2071_v4, %v2070_v2  ;;  %v258_v61 = vld [vmem:[%s4717_s0 + $0x760] sm:$0xff] }
 0x10a   :  { %v2151_v8 = vpop.f32.mrb[9].mxu1  ;;  %1568 = vmatprep.mubr.f32.mxu0 %v195_v63  ;;  %1709 = vmatmul.mubr.f32.gmra.mrb[114].mxu1 %v180_v0  ;;  %v275_v63 = vld [vmem:[%s4717_s0 + $0x7e8] sm:$0xff]  ;;  %v260_v0 = vld [vmem:[%s4717_s0 + $0x770] sm:$0xff] }
 0x10b   :  { %v2152_v11 = vadd.f32 %v2151_v8, %v2150_v5  ;;  %2019 = vmatprep.mubr.msk.f32.mxu1 %vm535_vm0, %v197_v3  ;;  %v671_v14 = vadd.f32 %v2072_v7, %v4333_v21  ;;  %v2073_v15 = vpop.f32.mrb[10].mxu0  ;;  %v277_v3 = vld [vmem:[%s4717_s0 + $0x7f8] sm:$0xff] }
 0x10c   :  { %v2074_v17 = vpop.f32.mrb[11].mxu0 }
 0x10d   :  { %1569 = vmatmul.mubr.f32.gmra.mrb[116].mxu0 %v194_v10  ;;  %v2153_v18 = vpop.f32.mrb[10].mxu1  ;;  %v4413_v19 = vadd.f32 %v2152_v11, %v671_v14  ;;  %v2075_v20 = vadd.f32 %v2074_v17, %v2073_v15  ;;  %v274_v11 = vld [vmem:[%s4717_s0 + $0x7e0] sm:$0xff] }
 0x10e   :  { %v2154_v22 = vpop.f32.mrb[11].mxu1  ;;  %1573 = vmatprep.mubr.f32.mxu0 %v211_v12  ;;  %1714 = vmatmul.mubr.f32.gmra.mrb[116].mxu1 %v196_v13  ;;  %v276_v13 = vld [vmem:[%s4717_s0 + $0x7f0] sm:$0xff] }
 0x10f   :  { %v2155_v24 = vadd.f32 %v2154_v22, %v2153_v18  ;;  %2020 = vmatprep.mubr.msk.f32.mxu1 %vm535_vm0, %v213_v16  ;;  %v676_v27 = vadd.f32 %v2075_v20, %v4333_v21  ;;  %v2076_v28 = vpop.f32.mrb[12].mxu0 }
 0x110   :  { %v2077_v30 = vpop.f32.mrb[13].mxu0 }
 0x111   :  { %1574 = vmatmul.mubr.f32.gmra.mrb[118].mxu0 %v210_v23  ;;  %v2156_v31 = vpop.f32.mrb[12].mxu1  ;;  %v4429_v32 = vadd.f32 %v2155_v24, %v676_v27  ;;  %v2078_v33 = vadd.f32 %v2077_v30, %v2076_v28 }
 0x112   :  { %v2157_v34 = vpop.f32.mrb[13].mxu1  ;;  %1578 = vmatprep.mubr.f32.mxu0 %v227_v25  ;;  %1719 = vmatmul.mubr.f32.gmra.mrb[118].mxu1 %v212_v26 }
 0x113   :  { %v2158_v37 = vadd.f32 %v2157_v34, %v2156_v31  ;;  %2021 = vmatprep.mubr.msk.f32.mxu1 %vm535_vm0, %v229_v29  ;;  %v681_v40 = vadd.f32 %v2078_v33, %v4333_v21  ;;  %v2079_v41 = vpop.f32.mrb[14].mxu0 }
 0x114   :  { %v2080_v43 = vpop.f32.mrb[15].mxu0 }
 0x115   :  { %1579 = vmatmul.mubr.f32.gmra.mrb[120].mxu0 %v226_v36  ;;  %v2159_v44 = vpop.f32.mrb[14].mxu1  ;;  %v4445_v45 = vadd.f32 %v2158_v37, %v681_v40  ;;  %v2081_v46 = vadd.f32 %v2080_v43, %v2079_v41 }
 0x116   :  { %v2160_v48 = vpop.f32.mrb[15].mxu1  ;;  %1583 = vmatprep.mubr.f32.mxu0 %v243_v38  ;;  %1724 = vmatmul.mubr.f32.gmra.mrb[120].mxu1 %v228_v39 }
 0x117   :  { %v2161_v50 = vadd.f32 %v2160_v48, %v2159_v44  ;;  %2022 = vmatprep.mubr.msk.f32.mxu1 %vm535_vm0, %v245_v42  ;;  %v686_v52 = vadd.f32 %v2081_v46, %v4333_v21  ;;  %v2082_v53 = vpop.f32.mrb[16].mxu0 }
 0x118   :  { %v2083_v55 = vpop.f32.mrb[17].mxu0 }
 0x119   :  { %1584 = vmatmul.mubr.f32.gmra.mrb[122].mxu0 %v242_v49  ;;  %v2162_v56 = vpop.f32.mrb[16].mxu1  ;;  %v4461_v57 = vadd.f32 %v2161_v50, %v686_v52  ;;  %v2084_v59 = vadd.f32 %v2083_v55, %v2082_v53 }
 0x11a   :  { %v2163_v60 = vpop.f32.mrb[17].mxu1  ;;  %1588 = vmatprep.mubr.f32.mxu0 %v259_v51  ;;  %1729 = vmatmul.mubr.f32.gmra.mrb[122].mxu1 %v244_v9 }
 0x11b   :  { %v2164_v62 = vadd.f32 %v2163_v60, %v2162_v56  ;;  %2023 = vmatprep.mubr.msk.f32.mxu1 %vm535_vm0, %v261_v54  ;;  %v691_v1 = vadd.f32 %v2084_v59, %v4333_v21  ;;  %v2085_v2 = vpop.f32.mrb[18].mxu0 }
 0x11c   :  { %v2086_v4 = vpop.f32.mrb[19].mxu0 }
 0x11d   :  { %1589 = vmatmul.mubr.f32.gmra.mrb[124].mxu0 %v258_v61  ;;  %v2165_v5 = vpop.f32.mrb[18].mxu1  ;;  %v4477_v7 = vadd.f32 %v2164_v62, %v691_v1  ;;  %v2087_v8 = vadd.f32 %v2086_v4, %v2085_v2 }
 0x11e   :  { %v2166_v10 = vpop.f32.mrb[19].mxu1  ;;  %1593 = vmatprep.mubr.f32.mxu0 %v275_v63  ;;  %1734 = vmatmul.mubr.f32.gmra.mrb[124].mxu1 %v260_v0 }
 0x11f   :  { %v2167_v12 = vadd.f32 %v2166_v10, %v2165_v5  ;;  %2024 = vmatprep.mubr.msk.f32.mxu1 %vm535_vm0, %v277_v3  ;;  %v696_v14 = vadd.f32 %v2087_v8, %v4333_v21  ;;  %v2088_v15 = vpop.f32.mrb[20].mxu0 }
 0x120   :  { %v2089_v16 = vpop.f32.mrb[21].mxu0 }
 0x121   :  { %1594 = vmatmul.mubr.f32.gmra.mrb[126].mxu0 %v274_v11  ;;  %v2168_v17 = vpop.f32.mrb[20].mxu1  ;;  %v4487_v18 = vadd.f32 %v2167_v12, %v696_v14  ;;  %v2090_v20 = vadd.f32 %v2089_v16, %v2088_v15 }
 0x122   :  { %v2169_v22 = vpop.f32.mrb[21].mxu1  ;;  %1739 = vmatmul.mubr.f32.gmra.mrb[126].mxu1 %v276_v13 }
 0x123   :  { %v2170_v23 = vadd.f32 %v2169_v22, %v2168_v17  ;;  %v701_v24 = vadd.f32 %v2090_v20, %v4333_v21  ;;  %v2091_v25 = vpop.f32.mrb[22].mxu0 }
 0x124   :  { %v2092_v26 = vpop.f32.mrb[23].mxu0 }
 0x125   :  { %v2171_v27 = vpop.f32.mrb[22].mxu1  ;;  %v4490_v28 = vadd.f32 %v2170_v23, %v701_v24  ;;  %v2093_v29 = vadd.f32 %v2092_v26, %v2091_v25 }
 0x126   :  { %v2172_v30 = vpop.f32.mrb[23].mxu1 }
 0x127   :  { %v2173_v31 = vadd.f32 %v2172_v30, %v2171_v27  ;;  %v706_v33 = vadd.f32 %v2093_v29, %v4333_v21  ;;  %v2094_v34 = vpop.f32.mrb[24].mxu0 }
 0x128   :  { %v2095_v36 = vpop.f32.mrb[25].mxu0 }
 0x129   :  { %v2174_v37 = vpop.f32.mrb[24].mxu1  ;;  %v4493_v38 = vadd.f32 %v2173_v31, %v706_v33  ;;  %v2096_v39 = vadd.f32 %v2095_v36, %v2094_v34 }
 0x12a   :  { %v2175_v40 = vpop.f32.mrb[25].mxu1 }
 0x12b   :  { %v2176_v41 = vadd.f32 %v2175_v40, %v2174_v37  ;;  %v711_v42 = vadd.f32 %v2096_v39, %v4333_v21  ;;  %v2097_v43 = vpop.f32.mrb[26].mxu0 }
 0x12c   :  { %v2098_v44 = vpop.f32.mrb[27].mxu0 }
 0x12d   :  { %v2177_v46 = vpop.f32.mrb[26].mxu1  ;;  %v4496_v48 = vadd.f32 %v2176_v41, %v711_v42  ;;  %v2099_v49 = vadd.f32 %v2098_v44, %v2097_v43 }
 0x12e   :  { %v2178_v50 = vpop.f32.mrb[27].mxu1 }
 0x12f   :  { %v2179_v51 = vadd.f32 %v2178_v50, %v2177_v46  ;;  %v716_v9 = vadd.f32 %v2099_v49, %v4333_v21  ;;  %v2100_v52 = vpop.f32.mrb[28].mxu0 }
 0x130   :  { %v2101_v53 = vpop.f32.mrb[29].mxu0 }
 0x131   :  { %v2180_v54 = vpop.f32.mrb[28].mxu1  ;;  %v4499_v55 = vadd.f32 %v2179_v51, %v716_v9  ;;  %v2102_v56 = vadd.f32 %v2101_v53, %v2100_v52 }
 0x132   :  { %v2181_v59 = vpop.f32.mrb[29].mxu1 }
 0x133   :  { %v2182_v60 = vadd.f32 %v2181_v59, %v2180_v54  ;;  %v721_v61 = vadd.f32 %v2102_v56, %v4333_v21  ;;  %v2103_v62 = vpop.f32.mrb[30].mxu0 }
 0x134   :  { %v2104_v63 = vpop.f32.mrb[31].mxu0 }
 0x135   :  { %v2183_v0 = vpop.f32.mrb[30].mxu1  ;;  %v4502_v1 = vadd.f32 %v2182_v60, %v721_v61  ;;  %v2105_v2 = vadd.f32 %v2104_v63, %v2103_v62 }
 0x136   :  { %v2184_v3 = vpop.f32.mrb[31].mxu1 }
 0x137   :  { %v2185_v4 = vadd.f32 %v2184_v3, %v2183_v0  ;;  %v726_v5 = vadd.f32 %v2105_v2, %v4333_v21  ;;  %v2218_v8 = vpop.f32.mrb[32].mxu0 }
 0x138   :  { %v2219_v10 = vpop.f32.mrb[33].mxu0 }
 0x139   :  { %v2298_v11 = vpop.f32.mrb[32].mxu1  ;;  %v4505_v12 = vadd.f32 %v2185_v4, %v726_v5  ;;  %v2220_v13 = vadd.f32 %v2219_v10, %v2218_v8 }
 0x13a   :  { %v2299_v14 = vpop.f32.mrb[33].mxu1 }
 0x13b   :  { %v2300_v15 = vadd.f32 %v2299_v14, %v2298_v11  ;;  %v941_v16 = vadd.f32 %v2220_v13, %v4349_v35  ;;  %v2221_v17 = vpop.f32.mrb[34].mxu0 }
 0x13c   :  { %v2222_v20 = vpop.f32.mrb[35].mxu0 }
 0x13d   :  { %v2301_v22 = vpop.f32.mrb[34].mxu1  ;;  %v4508_v23 = vadd.f32 %v2300_v15, %v941_v16  ;;  %v2223_v24 = vadd.f32 %v2222_v20, %v2221_v17 }
 0x13e   :  { %v2302_v25 = vpop.f32.mrb[35].mxu1 }
 0x13f   :  { %v2303_v26 = vadd.f32 %v2302_v25, %v2301_v22  ;;  %v946_v21 = vadd.f32 %v2223_v24, %v4365_v47  ;;  %v2224_v27 = vpop.f32.mrb[36].mxu0 }
 0x140   :  { %v2225_v29 = vpop.f32.mrb[37].mxu0 }
 0x141   :  { %v2304_v30 = vpop.f32.mrb[36].mxu1  ;;  %v4511_v31 = vadd.f32 %v2303_v26, %v946_v21  ;;  %v2226_v33 = vadd.f32 %v2225_v29, %v2224_v27 }
 0x142   :  { %v2305_v34 = vpop.f32.mrb[37].mxu1 }
 0x143   :  { %v2306_v36 = vadd.f32 %v2305_v34, %v2304_v30  ;;  %v951_v35 = vadd.f32 %v2226_v33, %v4381_v58  ;;  %v2227_v37 = vpop.f32.mrb[38].mxu0 }
 0x144   :  { %v2228_v39 = vpop.f32.mrb[39].mxu0 }
 0x145   :  { %v2307_v40 = vpop.f32.mrb[38].mxu1  ;;  %v4514_v41 = vadd.f32 %v2306_v36, %v951_v35  ;;  %v2229_v42 = vadd.f32 %v2228_v39, %v2227_v37 }
 0x146   :  { %v2308_v43 = vpop.f32.mrb[39].mxu1 }
 0x147   :  { %v2309_v44 = vadd.f32 %v2308_v43, %v2307_v40  ;;  %v956_v47 = vadd.f32 %v2229_v42, %v4397_v6  ;;  %v2230_v46 = vpop.f32.mrb[40].mxu0 }
 0x148   :  { %v2231_v49 = vpop.f32.mrb[41].mxu0 }
 0x149   :  { %v2310_v50 = vpop.f32.mrb[40].mxu1  ;;  %v4517_v51 = vadd.f32 %v2309_v44, %v956_v47  ;;  %v2232_v9 = vadd.f32 %v2231_v49, %v2230_v46 }
 0x14a   :  { %v2311_v52 = vpop.f32.mrb[41].mxu1 }
 0x14b   :  { %v2312_v53 = vadd.f32 %v2311_v52, %v2310_v50  ;;  %v961_v58 = vadd.f32 %v2232_v9, %v4413_v19  ;;  %v2233_v54 = vpop.f32.mrb[42].mxu0 }
 0x14c   :  { %v2234_v56 = vpop.f32.mrb[43].mxu0 }
 0x14d   :  { %v2313_v59 = vpop.f32.mrb[42].mxu1  ;;  %v4520_v60 = vadd.f32 %v2312_v53, %v961_v58  ;;  %v2235_v61 = vadd.f32 %v2234_v56, %v2233_v54 }
 0x14e   :  { %v2314_v62 = vpop.f32.mrb[43].mxu1 }
 0x14f   :  { %v2315_v63 = vadd.f32 %v2314_v62, %v2313_v59  ;;  %v966_v6 = vadd.f32 %v2235_v61, %v4429_v32  ;;  %v2236_v0 = vpop.f32.mrb[44].mxu0 }
 0x150   :  { %v2237_v2 = vpop.f32.mrb[45].mxu0 }
 0x151   :  { %v2316_v3 = vpop.f32.mrb[44].mxu1  ;;  %v4523_v4 = vadd.f32 %v2315_v63, %v966_v6  ;;  %v2238_v5 = vadd.f32 %v2237_v2, %v2236_v0 }
 0x152   :  { %v2317_v8 = vpop.f32.mrb[45].mxu1 }
 0x153   :  { %v2318_v10 = vadd.f32 %v2317_v8, %v2316_v3  ;;  %v971_v19 = vadd.f32 %v2238_v5, %v4445_v45  ;;  %v2239_v11 = vpop.f32.mrb[46].mxu0 }
 0x154   :  { %v2240_v13 = vpop.f32.mrb[47].mxu0 }
 0x155   :  { %v2319_v14 = vpop.f32.mrb[46].mxu1  ;;  %v4526_v15 = vadd.f32 %v2318_v10, %v971_v19  ;;  %v2241_v16 = vadd.f32 %v2240_v13, %v2239_v11 }
 0x156   :  { %v2320_v17 = vpop.f32.mrb[47].mxu1 }
 0x157   :  { %v2321_v20 = vadd.f32 %v2320_v17, %v2319_v14  ;;  %v976_v32 = vadd.f32 %v2241_v16, %v4461_v57  ;;  %v2242_v22 = vpop.f32.mrb[48].mxu0 }
 0x158   :  { %v2243_v24 = vpop.f32.mrb[49].mxu0 }
 0x159   :  { %v2322_v25 = vpop.f32.mrb[48].mxu1  ;;  %v4529_v26 = vadd.f32 %v2321_v20, %v976_v32  ;;  %v2244_v21 = vadd.f32 %v2243_v24, %v2242_v22 }
 0x15a   :  { %v2323_v27 = vpop.f32.mrb[49].mxu1 }
 0x15b   :  { %v2324_v29 = vadd.f32 %v2323_v27, %v2322_v25  ;;  %v981_v45 = vadd.f32 %v2244_v21, %v4477_v7  ;;  %v2245_v30 = vpop.f32.mrb[50].mxu0 }
 0x15c   :  { %v2246_v33 = vpop.f32.mrb[51].mxu0 }
 0x15d   :  { %v2325_v34 = vpop.f32.mrb[50].mxu1  ;;  %v4532_v36 = vadd.f32 %v2324_v29, %v981_v45  ;;  %v2247_v35 = vadd.f32 %v2246_v33, %v2245_v30 }
 0x15e   :  { %v2326_v37 = vpop.f32.mrb[51].mxu1 }
 0x15f   :  { %v2327_v39 = vadd.f32 %v2326_v37, %v2325_v34  ;;  %v986_v57 = vadd.f32 %v2247_v35, %v4487_v18  ;;  %v2248_v40 = vpop.f32.mrb[52].mxu0 }
 0x160   :  { %v2249_v42 = vpop.f32.mrb[53].mxu0 }
 0x161   :  { %v2328_v43 = vpop.f32.mrb[52].mxu1  ;;  %v4535_v44 = vadd.f32 %v2327_v39, %v986_v57  ;;  %v2250_v47 = vadd.f32 %v2249_v42, %v2248_v40 }
 0x162   :  { %v2329_v46 = vpop.f32.mrb[53].mxu1 }
 0x163   :  { %v2330_v49 = vadd.f32 %v2329_v46, %v2328_v43  ;;  %v991_v7 = vadd.f32 %v2250_v47, %v4490_v28  ;;  %v2251_v50 = vpop.f32.mrb[54].mxu0 }
 0x164   :  { %v2252_v9 = vpop.f32.mrb[55].mxu0 }
 0x165   :  { %v2331_v52 = vpop.f32.mrb[54].mxu1  ;;  %v4538_v53 = vadd.f32 %v2330_v49, %v991_v7  ;;  %v2253_v58 = vadd.f32 %v2252_v9, %v2251_v50 }
 0x166   :  { %v2332_v54 = vpop.f32.mrb[55].mxu1 }
 0x167   :  { %v2333_v56 = vadd.f32 %v2332_v54, %v2331_v52  ;;  %v996_v18 = vadd.f32 %v2253_v58, %v4493_v38  ;;  %v2254_v59 = vpop.f32.mrb[56].mxu0 }
 0x168   :  { %v2255_v61 = vpop.f32.mrb[57].mxu0 }
 0x169   :  { %v2334_v62 = vpop.f32.mrb[56].mxu1  ;;  %v4541_v63 = vadd.f32 %v2333_v56, %v996_v18  ;;  %v2256_v6 = vadd.f32 %v2255_v61, %v2254_v59 }
 0x16a   :  { %v2335_v0 = vpop.f32.mrb[57].mxu1 }
 0x16b   :  { %v2336_v2 = vadd.f32 %v2335_v0, %v2334_v62  ;;  %v1001_v28 = vadd.f32 %v2256_v6, %v4496_v48  ;;  %v2257_v3 = vpop.f32.mrb[58].mxu0 }
 0x16c   :  { %v2258_v5 = vpop.f32.mrb[59].mxu0 }
 0x16d   :  { %v2337_v8 = vpop.f32.mrb[58].mxu1  ;;  %v4544_v10 = vadd.f32 %v2336_v2, %v1001_v28  ;;  %v2259_v19 = vadd.f32 %v2258_v5, %v2257_v3 }
 0x16e   :  { %v2338_v11 = vpop.f32.mrb[59].mxu1 }
 0x16f   :  { %v2339_v13 = vadd.f32 %v2338_v11, %v2337_v8  ;;  %v1006_v38 = vadd.f32 %v2259_v19, %v4499_v55  ;;  %v2260_v14 = vpop.f32.mrb[60].mxu0 }
 0x170   :  { %v2261_v16 = vpop.f32.mrb[61].mxu0 }
 0x171   :  { %v2340_v17 = vpop.f32.mrb[60].mxu1  ;;  %v4547_v20 = vadd.f32 %v2339_v13, %v1006_v38  ;;  %v2262_v32 = vadd.f32 %v2261_v16, %v2260_v14 }
 0x172   :  { %v2341_v22 = vpop.f32.mrb[61].mxu1 }
 0x173   :  { %v2342_v24 = vadd.f32 %v2341_v22, %v2340_v17  ;;  %v1011_v48 = vadd.f32 %v2262_v32, %v4502_v1  ;;  %v2263_v25 = vpop.f32.mrb[62].mxu0 }
 0x174   :  { %v2264_v21 = vpop.f32.mrb[63].mxu0 }
 0x175   :  { %v2343_v27 = vpop.f32.mrb[62].mxu1  ;;  %v4550_v29 = vadd.f32 %v2342_v24, %v1011_v48  ;;  %v2265_v45 = vadd.f32 %v2264_v21, %v2263_v25 }
 0x176   :  { %v2344_v30 = vpop.f32.mrb[63].mxu1 }
 0x177   :  { %v2345_v33 = vadd.f32 %v2344_v30, %v2343_v27  ;;  %v1016_v55 = vadd.f32 %v2265_v45, %v4505_v12  ;;  %v2378_v34 = vpop.f32.mrb[64].mxu0 }
 0x178   :  { %v2379_v35 = vpop.f32.mrb[65].mxu0 }
 0x179   :  { %v2458_v37 = vpop.f32.mrb[64].mxu1  ;;  %v4553_v39 = vadd.f32 %v2345_v33, %v1016_v55  ;;  %v2380_v57 = vadd.f32 %v2379_v35, %v2378_v34 }
 0x17a   :  { %v2459_v40 = vpop.f32.mrb[65].mxu1 }
 0x17b   :  { %v2460_v42 = vadd.f32 %v2459_v40, %v2458_v37  ;;  %v1231_v1 = vadd.f32 %v2380_v57, %v4508_v23  ;;  %v2381_v43 = vpop.f32.mrb[66].mxu0 }
 0x17c   :  { %v2382_v47 = vpop.f32.mrb[67].mxu0 }
 0x17d   :  { %v2461_v46 = vpop.f32.mrb[66].mxu1  ;;  %v4556_v49 = vadd.f32 %v2460_v42, %v1231_v1  ;;  %v2383_v7 = vadd.f32 %v2382_v47, %v2381_v43 }
 0x17e   :  { %v2462_v50 = vpop.f32.mrb[67].mxu1 }
 0x17f   :  { %v2463_v9 = vadd.f32 %v2462_v50, %v2461_v46  ;;  %v1236_v12 = vadd.f32 %v2383_v7, %v4511_v31 }
 0x180   :  { %v2384_v52 = vpop.f32.mrb[68].mxu0 }
 0x181   :  { %v2385_v58 = vpop.f32.mrb[69].mxu0  ;;  %v2464_v54 = vpop.f32.mrb[68].mxu1  ;;  %v4559_v56 = vadd.f32 %v2463_v9, %v1236_v12 }
 0x182   :  { %v2386_v18 = vadd.f32 %v2385_v58, %v2384_v52  ;;  %v2465_v59 = vpop.f32.mrb[69].mxu1 }
 0x183   :  { %v2466_v61 = vadd.f32 %v2465_v59, %v2464_v54 }
 0x184   :  { %v1241_v23 = vadd.f32 %v2386_v18, %v4514_v41  ;;  %v2387_v62 = vpop.f32.mrb[70].mxu0 }
 0x185   :  { %v2388_v6 = vpop.f32.mrb[71].mxu0  ;;  %v2467_v0 = vpop.f32.mrb[70].mxu1 }
 0x186   :  { %v4562_v2 = vadd.f32 %v2466_v61, %v1241_v23  ;;  %v2389_v28 = vadd.f32 %v2388_v6, %v2387_v62  ;;  %v2468_v3 = vpop.f32.mrb[71].mxu1 }
 0x187   :  { %v2469_v5 = vadd.f32 %v2468_v3, %v2467_v0 }
 0x188   :  { %v1246_v31 = vadd.f32 %v2389_v28, %v4517_v51  ;;  %v2390_v8 = vpop.f32.mrb[72].mxu0 }
 0x189   :  { %v2391_v19 = vpop.f32.mrb[73].mxu0  ;;  %v2470_v11 = vpop.f32.mrb[72].mxu1 }
 0x18a   :  { %v4565_v13 = vadd.f32 %v2469_v5, %v1246_v31  ;;  %v2392_v38 = vadd.f32 %v2391_v19, %v2390_v8  ;;  %v2471_v14 = vpop.f32.mrb[73].mxu1 }
 0x18b   :  { %v2472_v16 = vadd.f32 %v2471_v14, %v2470_v11 }
 0x18c   :  { %v1251_v41 = vadd.f32 %v2392_v38, %v4520_v60  ;;  %v2393_v17 = vpop.f32.mrb[74].mxu0 }
 0x18d   :  { %v2394_v32 = vpop.f32.mrb[75].mxu0  ;;  %v2473_v22 = vpop.f32.mrb[74].mxu1 }
 0x18e   :  { %v4568_v24 = vadd.f32 %v2472_v16, %v1251_v41  ;;  %v2395_v48 = vadd.f32 %v2394_v32, %v2393_v17  ;;  %v2474_v25 = vpop.f32.mrb[75].mxu1 }
 0x18f   :  { %v2475_v21 = vadd.f32 %v2474_v25, %v2473_v22 }
 0x190   :  { %v1256_v51 = vadd.f32 %v2395_v48, %v4523_v4  ;;  %v2396_v27 = vpop.f32.mrb[76].mxu0 }
 0x191   :  { %v2397_v45 = vpop.f32.mrb[77].mxu0  ;;  %v2476_v30 = vpop.f32.mrb[76].mxu1 }
 0x192   :  { %v4571_v33 = vadd.f32 %v2475_v21, %v1256_v51  ;;  %v2398_v55 = vadd.f32 %v2397_v45, %v2396_v27  ;;  %v2477_v34 = vpop.f32.mrb[77].mxu1 }
 0x193   :  { %v2478_v35 = vadd.f32 %v2477_v34, %v2476_v30 }
 0x194   :  { %v1261_v60 = vadd.f32 %v2398_v55, %v4526_v15  ;;  %v2399_v37 = vpop.f32.mrb[78].mxu0 }
 0x195   :  { %v2400_v57 = vpop.f32.mrb[79].mxu0  ;;  %v2479_v40 = vpop.f32.mrb[78].mxu1 }
 0x196   :  { %v4574_v42 = vadd.f32 %v2478_v35, %v1261_v60  ;;  %v2401_v1 = vadd.f32 %v2400_v57, %v2399_v37  ;;  %v2480_v43 = vpop.f32.mrb[79].mxu1 }
 0x197   :  { %v2481_v47 = vadd.f32 %v2480_v43, %v2479_v40 }
 0x198   :  { %v1266_v4 = vadd.f32 %v2401_v1, %v4529_v26  ;;  %v2402_v46 = vpop.f32.mrb[80].mxu0 }
 0x199   :  { %v2403_v7 = vpop.f32.mrb[81].mxu0  ;;  %v2482_v50 = vpop.f32.mrb[80].mxu1 }
 0x19a   :  { %v4577_v9 = vadd.f32 %v2481_v47, %v1266_v4  ;;  %v2404_v12 = vadd.f32 %v2403_v7, %v2402_v46  ;;  %v2483_v52 = vpop.f32.mrb[81].mxu1 }
 0x19b   :  { %v2484_v58 = vadd.f32 %v2483_v52, %v2482_v50 }
 0x19c   :  { %v1271_v15 = vadd.f32 %v2404_v12, %v4532_v36  ;;  %v2405_v54 = vpop.f32.mrb[82].mxu0 }
 0x19d   :  { %v2406_v18 = vpop.f32.mrb[83].mxu0  ;;  %v2485_v59 = vpop.f32.mrb[82].mxu1 }
 0x19e   :  { %v4580_v61 = vadd.f32 %v2484_v58, %v1271_v15  ;;  %v2407_v23 = vadd.f32 %v2406_v18, %v2405_v54  ;;  %v2486_v62 = vpop.f32.mrb[83].mxu1 }
 0x19f   :  { %v2487_v6 = vadd.f32 %v2486_v62, %v2485_v59 }
 0x1a0   :  { %v1276_v26 = vadd.f32 %v2407_v23, %v4535_v44  ;;  %v2408_v0 = vpop.f32.mrb[84].mxu0 }
 0x1a1   :  { %v2409_v28 = vpop.f32.mrb[85].mxu0  ;;  %v2488_v3 = vpop.f32.mrb[84].mxu1 }
 0x1a2   :  { %v4583_v5 = vadd.f32 %v2487_v6, %v1276_v26  ;;  %v2410_v31 = vadd.f32 %v2409_v28, %v2408_v0  ;;  %v2489_v8 = vpop.f32.mrb[85].mxu1 }
 0x1a3   :  { %v2490_v19 = vadd.f32 %v2489_v8, %v2488_v3 }
 0x1a4   :  { %v1281_v36 = vadd.f32 %v2410_v31, %v4538_v53  ;;  %v2411_v11 = vpop.f32.mrb[86].mxu0 }
 0x1a5   :  { %v2412_v38 = vpop.f32.mrb[87].mxu0  ;;  %v2491_v14 = vpop.f32.mrb[86].mxu1 }
 0x1a6   :  { %v4586_v16 = vadd.f32 %v2490_v19, %v1281_v36  ;;  %v2413_v41 = vadd.f32 %v2412_v38, %v2411_v11  ;;  %v2492_v17 = vpop.f32.mrb[87].mxu1 }
 0x1a7   :  { %v2493_v32 = vadd.f32 %v2492_v17, %v2491_v14 }
 0x1a8   :  { %v1286_v44 = vadd.f32 %v2413_v41, %v4541_v63  ;;  %v2414_v22 = vpop.f32.mrb[88].mxu0 }
 0x1a9   :  { %v2415_v48 = vpop.f32.mrb[89].mxu0  ;;  %v2494_v25 = vpop.f32.mrb[88].mxu1 }
 0x1aa   :  { %v4589_v21 = vadd.f32 %v2493_v32, %v1286_v44  ;;  %v2416_v51 = vadd.f32 %v2415_v48, %v2414_v22  ;;  %v2495_v27 = vpop.f32.mrb[89].mxu1 }
 0x1ab   :  { %v2496_v45 = vadd.f32 %v2495_v27, %v2494_v25 }
 0x1ac   :  { %v1291_v53 = vadd.f32 %v2416_v51, %v4544_v10  ;;  %v2417_v30 = vpop.f32.mrb[90].mxu0 }
 0x1ad   :  { %v2418_v55 = vpop.f32.mrb[91].mxu0  ;;  %v2497_v34 = vpop.f32.mrb[90].mxu1 }
 0x1ae   :  { %v4592_v35 = vadd.f32 %v2496_v45, %v1291_v53  ;;  %v2419_v60 = vadd.f32 %v2418_v55, %v2417_v30  ;;  %v2498_v37 = vpop.f32.mrb[91].mxu1 }
 0x1af   :  { %v2499_v57 = vadd.f32 %v2498_v37, %v2497_v34 }
 0x1b0   :  { %v1296_v63 = vadd.f32 %v2419_v60, %v4547_v20  ;;  %v2420_v40 = vpop.f32.mrb[92].mxu0 }
 0x1b1   :  { %v2421_v1 = vpop.f32.mrb[93].mxu0  ;;  %v2500_v43 = vpop.f32.mrb[92].mxu1 }
 0x1b2   :  { %v4595_v47 = vadd.f32 %v2499_v57, %v1296_v63  ;;  %v2422_v4 = vadd.f32 %v2421_v1, %v2420_v40  ;;  %v2501_v46 = vpop.f32.mrb[93].mxu1 }
 0x1b3   :  { %v2502_v7 = vadd.f32 %v2501_v46, %v2500_v43 }
 0x1b4   :  { %v1301_v10 = vadd.f32 %v2422_v4, %v4550_v29  ;;  %v2423_v50 = vpop.f32.mrb[94].mxu0 }
 0x1b5   :  { %v2424_v12 = vpop.f32.mrb[95].mxu0  ;;  %v2503_v52 = vpop.f32.mrb[94].mxu1 }
 0x1b6   :  { %v4598_v58 = vadd.f32 %v2502_v7, %v1301_v10  ;;  %v2425_v15 = vadd.f32 %v2424_v12, %v2423_v50  ;;  %v2504_v54 = vpop.f32.mrb[95].mxu1 }
 0x1b7   :  { %v2505_v18 = vadd.f32 %v2504_v54, %v2503_v52 }
 0x1b8   :  { %v1306_v20 = vadd.f32 %v2425_v15, %v4553_v39  ;;  %v2538_v59 = vpop.f32.mrb[96].mxu0  ;;  %v4608_v39 = vld [vmem:[%s4720_s3] ss:$0 sm:$0xff] }
 0x1b9   :  { %v2539_v23 = vpop.f32.mrb[97].mxu0  ;;  %v1665_v62 = vpop.f32.mrb[96].mxu1 }
 0x1ba   :  { %v4601_v6 = vadd.f32 %v2505_v18, %v1306_v20  ;;  %v2540_v26 = vadd.f32 %v2539_v23, %v2538_v59  ;;  %v1667_v0 = vpop.f32.mrb[97].mxu1 }
 0x1bc   :  { %v2541_v28 = vpop.f32.mrb[98].mxu0  ;;  %v1521_v29 = vadd.f32 %v2540_v26, %v4556_v49 }
 0x1bd   :  { %v2542_v3 = vpop.f32.mrb[99].mxu0  ;;  %v1670_v31 = vpop.f32.mrb[98].mxu1 }
 0x1be   :  { %v2543_v8 = vadd.f32 %v2542_v3, %v2541_v28  ;;  %v1666_v19 = vadd.f32 %v1665_v62, %v1521_v29  ;;  %v1672_v36 = vpop.f32.mrb[99].mxu1 }
 0x1c0   :  { %v1760_v11 = vmul.f32 0.2, %v1666_v19  ;;  %v2544_v38 = vpop.f32.mrb[100].mxu0  ;;  %v1526_v14 = vadd.f32 %v2543_v8, %v4559_v56  ;;  %vm1744_vm1 = vcmp.gt.f32.partialorder %v1666_v19, 0.0 }
 0x1c1   :  { %v2545_v41 = vpop.f32.mrb[101].mxu0  ;;  %v1675_v17 = vpop.f32.mrb[100].mxu1 }
 0x1c2   :  { %v2546_v32 = vadd.f32 %v2545_v41, %v2544_v38  ;;  %v1671_v44 = vadd.f32 %v1670_v31, %v1526_v14  ;;  %v1776_v49 = vsel %vm1744_vm1, %v1666_v19, %v1760_v11  ;;  %v1677_v22 = vpop.f32.mrb[101].mxu1  ;;  %vm1892_vm1 = vcmask 130112  }
 0x1c3   :  { %v1799_v48 = vmul.f32 %v4608_v39, %v1776_v49 }
 0x1c4   :  { %v1761_v25 = vmul.f32 0.2, %v1671_v44  ;;  %v2547_v51 = vpop.f32.mrb[102].mxu0  ;;  %v1531_v27 = vadd.f32 %v2546_v32, %v4562_v2  ;;  %vm1745_vm2 = vcmp.gt.f32.partialorder %v1671_v44, 0.0 }
 0x1c5   :  { %v2548_v56 = vpop.f32.mrb[103].mxu0  ;;  %1815 = vadd.xlane.f32.xlu0 %v1799_v48  ;;  %v1680_v45 = vpop.f32.mrb[102].mxu1 }
 0x1c6   :  { %v2549_v53 = vadd.f32 %v2548_v56, %v2547_v51  ;;  %v1676_v30 = vadd.f32 %v1675_v17, %v1531_v27  ;;  %v1777_v55 = vsel %vm1745_vm2, %v1671_v44, %v1761_v25  ;;  %v1682_v34 = vpop.f32.mrb[103].mxu1  ;;  %vm1899_vm2 = vcmask 195712  }
 0x1c7   :  { %v1800_v60 = vmul.f32 %v4608_v39, %v1777_v55 }
 0x1c8   :  { %v1762_v37 = vmul.f32 0.2, %v1676_v30  ;;  %v2550_v57 = vpop.f32.mrb[104].mxu0  ;;  %v1536_v63 = vadd.f32 %v2549_v53, %v4565_v13  ;;  %vm1746_vm3 = vcmp.gt.f32.partialorder %v1676_v30, 0.0 }
 0x1c9   :  { %v2551_v40 = vpop.f32.mrb[105].mxu0  ;;  %1817 = vadd.xlane.f32.xlu0 %v1800_v60  ;;  %v1685_v1 = vpop.f32.mrb[104].mxu1 }
 0x1ca   :  { %v2552_v43 = vadd.f32 %v2551_v40, %v2550_v57  ;;  %v1681_v2 = vadd.f32 %v1680_v45, %v1536_v63  ;;  %v1778_v4 = vsel %vm1746_vm3, %v1676_v30, %v1762_v37  ;;  %v1687_v46 = vpop.f32.mrb[105].mxu1  ;;  %vm1906_vm3 = vcmask 261312  }
 0x1cb   :  { %v1801_v7 = vmul.f32 %v4608_v39, %v1778_v4 }
 0x1cc   :  { %v1763_v10 = vmul.f32 0.2, %v1681_v2  ;;  %v2553_v50 = vpop.f32.mrb[106].mxu0  ;;  %v1541_v12 = vadd.f32 %v2552_v43, %v4568_v24  ;;  %vm1747_vm4 = vcmp.gt.f32.partialorder %v1681_v2, 0.0 }
 0x1cd   :  { %v2554_v52 = vpop.f32.mrb[107].mxu0  ;;  %1819 = vadd.xlane.f32.xlu1 %v1801_v7  ;;  %v1690_v15 = vpop.f32.mrb[106].mxu1 }
 0x1ce   :  { %v2555_v54 = vadd.f32 %v2554_v52, %v2553_v50  ;;  %v1686_v13 = vadd.f32 %v1685_v1, %v1541_v12  ;;  %v1779_v18 = vsel %vm1747_vm4, %v1681_v2, %v1763_v10  ;;  %v1692_v20 = vpop.f32.mrb[107].mxu1  ;;  %vm1913_vm4 = vcmask 326912  }
 0x1cf   :  { %v1802_v59 = vmul.f32 %v4608_v39, %v1779_v18 }
 0x1d0   :  { %v1764_v23 = vmul.f32 0.2, %v1686_v13  ;;  %v2556_v62 = vpop.f32.mrb[108].mxu0  ;;  %v1546_v26 = vadd.f32 %v2555_v54, %v4571_v33  ;;  %vm1748_vm5 = vcmp.gt.f32.partialorder %v1686_v13, 0.0 }
 0x1d1   :  { %v2557_v0 = vpop.f32.mrb[109].mxu0  ;;  %1821 = vadd.xlane.f32.xlu1 %v1802_v59  ;;  %v1695_v28 = vpop.f32.mrb[108].mxu1 }
 0x1d2   :  { %v2558_v29 = vadd.f32 %v2557_v0, %v2556_v62  ;;  %v1691_v24 = vadd.f32 %v1690_v15, %v1546_v26  ;;  %v1780_v3 = vsel %vm1748_vm5, %v1686_v13, %v1764_v23  ;;  %v1697_v31 = vpop.f32.mrb[109].mxu1  ;;  %vm1920_vm5 = vcmask 392512  }
 0x1d3   :  { %v1803_v8 = vmul.f32 %v4608_v39, %v1780_v3 }
 0x1d4   :  { %v1765_v19 = vmul.f32 0.2, %v1691_v24  ;;  %v2559_v36 = vpop.f32.mrb[110].mxu0  ;;  %v1551_v11 = vadd.f32 %v2558_v29, %v4574_v42  ;;  %vm1749_vm6 = vcmp.gt.f32.partialorder %v1691_v24, 0.0 }
 0x1d5   :  { %v2560_v38 = vpop.f32.mrb[111].mxu0  ;;  %1823 = vadd.xlane.f32.xlu0 %v1803_v8  ;;  %v1700_v14 = vpop.f32.mrb[110].mxu1 }
 0x1d6   :  { %v2561_v41 = vadd.f32 %v2560_v38, %v2559_v36  ;;  %v1696_v33 = vadd.f32 %v1695_v28, %v1551_v11  ;;  %v1781_v17 = vsel %vm1749_vm6, %v1691_v24, %v1765_v19  ;;  %v1702_v32 = vpop.f32.mrb[111].mxu1  ;;  %vm1927_vm6 = vcmask 458112  }
 0x1d7   :  { %v1804_v44 = vmul.f32 %v4608_v39, %v1781_v17 }
 0x1d8   :  { %v1766_v49 = vmul.f32 0.2, %v1696_v33  ;;  %v2562_v22 = vpop.f32.mrb[112].mxu0  ;;  %v1556_v48 = vadd.f32 %v2561_v41, %v4577_v9  ;;  %vm1750_vm7 = vcmp.gt.f32.partialorder %v1696_v33, 0.0 }
 0x1d9   :  { %v2563_v25 = vpop.f32.mrb[113].mxu0  ;;  %1825 = vadd.xlane.f32.xlu1 %v1804_v44  ;;  %v1705_v51 = vpop.f32.mrb[112].mxu1 }
 0x1da   :  { %v2564_v27 = vadd.f32 %v2563_v25, %v2562_v22  ;;  %v1701_v42 = vadd.f32 %v1700_v14, %v1556_v48  ;;  %v1782_v56 = vsel %vm1750_vm7, %v1696_v33, %v1766_v49  ;;  %v1707_v45 = vpop.f32.mrb[113].mxu1  ;;  %vm1934_vm7 = vcmask 523712  }
 0x1db   :  { %v1805_v53 = vmul.f32 %v4608_v39, %v1782_v56 }
 0x1dc   :  { %v1767_v30 = vmul.f32 0.2, %v1701_v42  ;;  %v2565_v55 = vpop.f32.mrb[114].mxu0  ;;  %v1561_v34 = vadd.f32 %v2564_v27, %v4580_v61  ;;  %vm1751_vm8 = vcmp.gt.f32.partialorder %v1701_v42, 0.0 }
 0x1dd   :  { %v2566_v60 = vpop.f32.mrb[115].mxu0  ;;  %1827 = vadd.xlane.f32.xlu0 %v1805_v53  ;;  %v1710_v37 = vpop.f32.mrb[114].mxu1 }
 0x1de   :  { %v2567_v57 = vadd.f32 %v2566_v60, %v2565_v55  ;;  %v1706_v9 = vadd.f32 %v1705_v51, %v1561_v34  ;;  %v1783_v63 = vsel %vm1751_vm8, %v1701_v42, %v1767_v30  ;;  %v1712_v40 = vpop.f32.mrb[115].mxu1  ;;  %vm1941_vm8 = vcmask 589312  }
 0x1df   :  { %v1806_v1 = vmul.f32 %v4608_v39, %v1783_v63 }
 0x1e0   :  { %v1768_v43 = vmul.f32 0.2, %v1706_v9  ;;  %v2568_v2 = vpop.f32.mrb[116].mxu0  ;;  %v1566_v4 = vadd.f32 %v2567_v57, %v4583_v5  ;;  %vm1752_vm9 = vcmp.gt.f32.partialorder %v1706_v9, 0.0 }
 0x1e1   :  { %v2569_v46 = vpop.f32.mrb[117].mxu0  ;;  %1829 = vadd.xlane.f32.xlu1 %v1806_v1  ;;  %v1715_v7 = vpop.f32.mrb[116].mxu1 }
 0x1e2   :  { %v2570_v10 = vadd.f32 %v2569_v46, %v2568_v2  ;;  %v1711_v61 = vadd.f32 %v1710_v37, %v1566_v4  ;;  %v1784_v50 = vsel %vm1752_vm9, %v1706_v9, %v1768_v43  ;;  %v1717_v12 = vpop.f32.mrb[117].mxu1  ;;  %vm1948_vm9 = vcmask 654912  }
 0x1e3   :  { %v1807_v52 = vmul.f32 %v4608_v39, %v1784_v50  ;;  %v1881_v12 = vlaneseq }
 0x1e4   :  { %v1769_v15 = vmul.f32 0.2, %v1711_v61  ;;  %v2571_v54 = vpop.f32.mrb[118].mxu0  ;;  %v1571_v13 = vadd.f32 %v2570_v10, %v4586_v16  ;;  %vm1753_vm10 = vcmp.gt.f32.partialorder %v1711_v61, 0.0 }
 0x1e5   :  { %v2572_v18 = vpop.f32.mrb[119].mxu0  ;;  %1831 = vadd.xlane.f32.xlu0 %v1807_v52  ;;  %v1720_v20 = vpop.f32.mrb[118].mxu1 }
 0x1e6   :  { %v2573_v59 = vadd.f32 %v2572_v18, %v2571_v54  ;;  %v1716_v5 = vadd.f32 %v1715_v7, %v1571_v13  ;;  %v1785_v23 = vsel %vm1753_vm10, %v1711_v61, %v1769_v15  ;;  %v1722_v62 = vpop.f32.mrb[119].mxu1  ;;  %v4640_v54 = vand.u32 127, %v1881_v12 }
 0x1e7   :  { %v1808_v26 = vmul.f32 %v4608_v39, %v1785_v23  ;;  %v4642_v13 = vshrl.u32 %v1881_v12, 7  ;;  %v4651_v62 = vstv %s4721_s4  ;;  %vm1955_vm10 = vcmask 720512   ;;  %s2876_s4 = smov [#allocation3]  }
 0x1e8   :  { %v1770_v0 = vmul.f32 0.2, %v1716_v5  ;;  %v2574_v28 = vpop.f32.mrb[120].mxu0  ;;  %v1576_v29 = vadd.f32 %v2573_v59, %v4589_v21  ;;  %vm1754_vm11 = vcmp.gt.f32.partialorder %v1716_v5, 0.0  ;;  %v1894_v59 = vadd.s32 4294967280, %v4640_v54  ;;  %s2000_s25 = sshll.u32 %s2876_s4, 4  ;;  %s2001_s25 = int_to_ptr.vmem [resolvable:$true] %s2000_s25 }
 0x1e9   :  { %v2575_v24 = vpop.f32.mrb[121].mxu0  ;;  %1833 = vadd.xlane.f32.xlu1 %v1808_v26  ;;  %v1725_v3 = vpop.f32.mrb[120].mxu1  ;;  %v1885_v26 = vsub.s32 %v4640_v54, %v4642_v13  ;;  %s2851_s26 = scalar_lea.vmem %s2001_s25, 16  ;;  %s2855_s27 = scalar_lea.vmem %s2001_s25, 32 }
 0x1ea   :  { %v2576_v31 = vadd.f32 %v2575_v24, %v2574_v28  ;;  %v1721_v16 = vadd.f32 %v1720_v20, %v1576_v29  ;;  %v1786_v8 = vsel %vm1754_vm11, %v1716_v5, %v1770_v0  ;;  %v1727_v19 = vpop.f32.mrb[121].mxu1  ;;  %v1887_v20 = vadd.s32 4294967288, %v4640_v54  ;;  %p2852_p0 = scmp.ne.s32.totalorder %s2001_s25, %s2851_s26  ;;  %p2856_p1 = scmp.lt.s32.totalorder %s2001_s25, %s2001_s25 }
 0x1eb   :  { %v1809_v36 = vmul.f32 %v4608_v39, %v1786_v8  ;;  %v1901_v5 = vadd.s32 4294967272, %v4640_v54  ;;  %v1915_v0 = vadd.s32 4294967256, %v4640_v54  ;;  %v1897_v24 = vsub.s32 %v1894_v59, %v4642_v13  ;;  %p2857_p2 = scmp.lt.s32.totalorder %s2855_s27, %s2851_s26 }
 0x1ec   :  { %v1771_v11 = vmul.f32 0.2, %v1721_v16  ;;  %v2577_v38 = vpop.f32.mrb[122].mxu0  ;;  %v1581_v14 = vadd.f32 %v2576_v31, %v4592_v35  ;;  %vm1755_vm12 = vcmp.gt.f32.partialorder %v1721_v16, 0.0  ;;  %v1890_v29 = vsub.s32 %v1887_v20, %v4642_v13 }
 0x1ed   :  { %v2578_v41 = vpop.f32.mrb[123].mxu0  ;;  %1835 = vadd.xlane.f32.xlu0 %v1809_v36  ;;  %v1730_v33 = vpop.f32.mrb[122].mxu1  ;;  %v1904_v31 = vsub.s32 %v1901_v5, %v4642_v13  ;;  %v1936_v36 = vadd.s32 4294967232, %v4640_v54  ;;  %vm1962_vm11 = vcmask 786112   ;;  %p2858_p3 = por %p2857_p2, %p2856_p1 }
 0x1ee   :  { %v2579_v17 = vadd.f32 %v2578_v41, %v2577_v38  ;;  %v1726_v21 = vadd.f32 %v1725_v3, %v1581_v14  ;;  %v1787_v32 = vsel %vm1755_vm12, %v1721_v16, %v1771_v11  ;;  %v1732_v44 = vpop.f32.mrb[123].mxu1  ;;  %v1922_v3 = vadd.s32 4294967248, %v4640_v54 }
 0x1ef   :  { %v1810_v49 = vmul.f32 %v4608_v39, %v1787_v32  ;;  %v1929_v16 = vadd.s32 4294967240, %v4640_v54  ;;  %v1918_v14 = vsub.s32 %v1915_v0, %v4642_v13  ;;  %v1943_v41 = vadd.s32 4294967224, %v4640_v54  ;;  %p2859_p4 = pnand %p2858_p3, %p2852_p0 }
 0x1f0   :  { %v1772_v22 = vmul.f32 0.2, %v1726_v21  ;;  %v2580_v48 = vpop.f32.mrb[124].mxu0  ;;  %v1586_v25 = vadd.f32 %v2579_v17, %v4595_v47  ;;  %vm1756_vm13 = vcmp.gt.f32.partialorder %v1726_v21, 0.0  ;;  %v1925_v32 = vsub.s32 %v1922_v3, %v4642_v13 }
 0x1f1   :  { %v2581_v51 = vpop.f32.mrb[125].mxu0  ;;  %1837 = vadd.xlane.f32.xlu1 %v1810_v49  ;;  %v1735_v27 = vpop.f32.mrb[124].mxu1  ;;  %v1932_v49 = vsub.s32 %v1929_v16, %v4642_v13  ;;  %vm1969_vm12 = vcmask 851712  }
 0x1f2   :  { %v2582_v42 = vadd.f32 %v2581_v51, %v2580_v48  ;;  %v1731_v35 = vadd.f32 %v1730_v33, %v1586_v25  ;;  %v1788_v56 = vsel %vm1756_vm13, %v1726_v21, %v1772_v22  ;;  %v1737_v45 = vpop.f32.mrb[125].mxu1  ;;  %v1950_v22 = vadd.s32 4294967216, %v4640_v54 }
 0x1f3   :  { %v1811_v53 = vmul.f32 %v4608_v39, %v1788_v56  ;;  %v1939_v51 = vsub.s32 %v1936_v36, %v4642_v13  ;;  %v1946_v45 = vsub.s32 %v1943_v41, %v4642_v13  ;;  %vm1976_vm13 = vcmask 917312  }
 0x1f4   :  { %v1773_v30 = vmul.f32 0.2, %v1731_v35  ;;  %v2583_v55 = vpop.f32.mrb[126].mxu0  ;;  %v1591_v34 = vadd.f32 %v2582_v42, %v4598_v58  ;;  %vm1757_vm14 = vcmp.gt.f32.partialorder %v1731_v35, 0.0  ;;  %v1957_v42 = vadd.s32 4294967208, %v4640_v54 }
 0x1f5   :  { %v2584_v60 = vpop.f32.mrb[127].mxu0  ;;  %1839 = vadd.xlane.f32.xlu0 %v1811_v53  ;;  %v1740_v37 = vpop.f32.mrb[126].mxu1 }
 0x1f6   :  { %v2585_v57 = vadd.f32 %v2584_v60, %v2583_v55  ;;  %v1736_v47 = vadd.f32 %v1735_v27, %v1591_v34  ;;  %v1789_v9 = vsel %vm1757_vm14, %v1731_v35, %v1773_v30  ;;  %v1742_v63 = vpop.f32.mrb[127].mxu1  ;;  %v1964_v60 = vadd.s32 4294967200, %v4640_v54 }
 0x1f7   :  { %v1812_v40 = vmul.f32 %v4608_v39, %v1789_v9  ;;  %v1971_v9 = vadd.s32 4294967192, %v4640_v54  ;;  %vm1983_vm14 = vcmask 982912  }
 0x1f8   :  { %v1774_v1 = vmul.f32 0.2, %v1736_v47  ;;  %v1596_v43 = vadd.f32 %v2585_v57, %v4601_v6  ;;  %vm1758_vm15 = vcmp.gt.f32.partialorder %v1736_v47, 0.0 }
 0x1f9   :  { %1841 = vadd.xlane.f32.xlu1 %v1812_v40  ;;  %v1974_v20 = vsub.s32 %v1971_v9, %v4642_v13 }
 0x1fa   :  { %v1741_v2 = vadd.f32 %v1740_v37, %v1596_v43  ;;  %v1790_v4 = vsel %vm1758_vm15, %v1736_v47, %v1774_v1  ;;  %v1953_v47 = vsub.s32 %v1950_v22, %v4642_v13  ;;  %v1960_v43 = vsub.s32 %v1957_v42, %v4642_v13 }
 0x1fb   :  { %v1813_v46 = vmul.f32 %v4608_v39, %v1790_v4  ;;  %vm1990_vm15 = vcmask 1048512  }
 0x1fc   :  { %v1775_v58 = vmul.f32 0.2, %v1741_v2  ;;  %vm1759_vm0 = vcmp.gt.f32.partialorder %v1741_v2, 0.0 }
 0x1fd   :  { %1843 = vadd.xlane.f32.xlu0 %v1813_v46 }
 0x1fe   :  { %v1791_v7 = vsel %vm1759_vm0, %v1741_v2, %v1775_v58 }
 0x1ff   :  { %v1814_v10 = vmul.f32 %v4608_v39, %v1791_v7  ;;  %v1908_v39 = vadd.s32 4294967264, %v4640_v54 }
 0x201   :  { %1845 = vadd.xlane.f32.xlu1 %v1814_v10  ;;  %v1911_v19 = vsub.s32 %v1908_v39, %v4642_v13  ;;  %v1978_v10 = vadd.s32 4294967184, %v4640_v54 }
 0x252   :  { %v1816_v61 = vpop.xlane.xlu0 %1815 }
 0x253   :  { %v1849_v17 = vadd.f32 %v4651_v62, %v1816_v61 }
 0x255   :  { %v1886_v30 = vrot.slane %v1849_v17, %v1885_v26 }
 0x256   :  { %v1818_v52 = vpop.xlane.xlu0 %1817 }
 0x257   :  { %v1850_v8 = vadd.f32 %v4651_v62, %v1818_v52  ;;  %v1967_v52 = vsub.s32 %v1964_v60, %v4642_v13 }
 0x259   :  { %v1891_v48 = vrot.slane %v1850_v8, %v1890_v29 }
 0x25a   :  { %v1820_v50 = vpop.xlane.xlu1 %1819 }
 0x25b   :  { %v1851_v38 = vadd.f32 %v4651_v62, %v1820_v50  ;;  %v1893_v63 = vsel %vm1892_vm1, %v1891_v48, %v1886_v30 }
 0x25d   :  { %v1898_v35 = vrot.slane %v1851_v38, %v1897_v24 }
 0x25e   :  { %v1822_v15 = vpop.xlane.xlu1 %1821 }
 0x25f   :  { %v1852_v21 = vadd.f32 %v4651_v62, %v1822_v15  ;;  %v1900_v4 = vsel %vm1899_vm2, %v1898_v35, %v1893_v63 }
 0x261   :  { %v1905_v55 = vrot.slane %v1852_v21, %v1904_v31 }
 0x262   :  { %v1824_v6 = vpop.xlane.xlu0 %1823 }
 0x263   :  { %v1853_v44 = vadd.f32 %v4651_v62, %v1824_v6  ;;  %v1907_v61 = vsel %vm1906_vm3, %v1905_v55, %v1900_v4 }
 0x265   :  { %v1912_v37 = vrot.slane %v1853_v44, %v1911_v19 }
 0x266   :  { %v1826_v18 = vpop.xlane.xlu1 %1825 }
 0x267   :  { %v1854_v25 = vadd.f32 %v4651_v62, %v1826_v18  ;;  %v1914_v15 = vsel %vm1913_vm4, %v1912_v37, %v1907_v61 }
 0x269   :  { %v1919_v40 = vrot.slane %v1854_v25, %v1918_v14 }
 0x26a   :  { %v1828_v23 = vpop.xlane.xlu0 %1827 }
 0x26b   :  { %v1855_v56 = vadd.f32 %v4651_v62, %v1828_v23  ;;  %v1921_v59 = vsel %vm1920_vm5, %v1919_v40, %v1914_v15  ;;  %v1985_v23 = vadd.s32 4294967176, %v4640_v54 }
 0x26d   :  { %v1926_v46 = vrot.slane %v1855_v56, %v1925_v32  ;;  %v1988_v36 = vsub.s32 %v1985_v23, %v4642_v13 }
 0x26e   :  { %v1830_v28 = vpop.xlane.xlu1 %1829 }
 0x26f   :  { %v1856_v34 = vadd.f32 %v4651_v62, %v1830_v28  ;;  %v1928_v26 = vsel %vm1927_vm6, %v1926_v46, %v1921_v59  ;;  %v1981_v28 = vsub.s32 %v1978_v10, %v4642_v13 }
 0x271   :  { %v1933_v50 = vrot.slane %v1856_v34, %v1932_v49 }
 0x272   :  { %v1832_v11 = vpop.xlane.xlu0 %1831 }
 0x273   :  { %v1857_v57 = vadd.f32 %v4651_v62, %v1832_v11  ;;  %v1935_v24 = vsel %vm1934_vm7, %v1933_v50, %v1928_v26 }
 0x275   :  { %v1940_v6 = vrot.slane %v1857_v57, %v1939_v51 }
 0x276   :  { %v1834_v33 = vpop.xlane.xlu1 %1833 }
 0x277   :  { %v1858_v1 = vadd.f32 %v4651_v62, %v1834_v33  ;;  %v1942_v16 = vsel %vm1941_vm8, %v1940_v6, %v1935_v24 }
 0x279   :  { %v1947_v5 = vrot.slane %v1858_v1, %v1946_v45 }
 0x27a   :  { %v1836_v27 = vpop.xlane.xlu0 %1835 }
 0x27b   :  { %v1859_v58 = vadd.f32 %v4651_v62, %v1836_v27  ;;  %v1949_v19 = vsel %vm1948_vm9, %v1947_v5, %v1942_v16 }
 0x27d   :  { %v1954_v0 = vrot.slane %v1859_v58, %v1953_v47 }
 0x27e   :  { %v1838_v53 = vpop.xlane.xlu1 %1837 }
 0x27f   :  { %v1860_v12 = vadd.f32 %v4651_v62, %v1838_v53  ;;  %v1956_v11 = vsel %vm1955_vm10, %v1954_v0, %v1949_v19 }
 0x281   :  { %v1961_v3 = vrot.slane %v1860_v12, %v1960_v43 }
 0x282   :  { %v1840_v2 = vpop.xlane.xlu0 %1839 }
 0x283   :  { %v1861_v18 = vadd.f32 %v4651_v62, %v1840_v2  ;;  %v1963_v41 = vsel %vm1962_vm11, %v1961_v3, %v1956_v11 }
 0x285   :  { %v1968_v8 = vrot.slane %v1861_v18, %v1967_v52 }
 0x286   :  { %v1842_v7 = vpop.xlane.xlu1 %1841 }
 0x287   :  { %v1862_v39 = vadd.f32 %v4651_v62, %v1842_v7  ;;  %v1970_v17 = vsel %vm1969_vm12, %v1968_v8, %v1963_v41 }
 0x289   :  { %v1975_v54 = vrot.slane %v1862_v39, %v1974_v20 }
 0x28a   :  { %v1844_v29 = vpop.xlane.xlu0 %1843 }
 0x28b   :  { %v1863_v31 = vadd.f32 %v4651_v62, %v1844_v29  ;;  %v1977_v32 = vsel %vm1976_vm13, %v1975_v54, %v1970_v17 }
 0x28d   :  { %v1982_v38 = vrot.slane %v1863_v31, %v1981_v28 }
 0x28e   :  { %v1846_v14 = vpop.xlane.xlu1 %1845 }
 0x28f   :  { %v1864_v33 = vadd.f32 %v4651_v62, %v1846_v14  ;;  %v1984_v44 = vsel %vm1983_vm14, %v1982_v38, %v1977_v32 }
 0x291   :  { %v1989_v21 = vrot.slane %v1864_v33, %v1988_v36 }
 0x293   :  { %v1991_v49 = vsel %vm1990_vm15, %v1989_v21, %v1984_v44 }
 0x294   :  { %1993 = vst [vmem:[#allocation3] sm:$0x1] %v1991_v49 }
 0x295   :  { %2862 = shalt.err (!%p2859_p4)
}
 0x296   :  { %s2863_s30 = scalar_lea.hbm %s4722_s5, 16 }
 0x297   :  { %p2864_p5 = scmp.ne.s32.totalorder %s4722_s5, %s2863_s30  ;;  %p2867_p6 = scmp.lt.u32.totalorder %s2863_s30, %s4722_s5 }
 0x299   :  { %p2869_p7 = pnand %p2867_p6, %p2864_p5 }
 0x29b   :  { %2872 = shalt.err (!%p2869_p7)
}
 0x29c   :  { %2003 = dma.vmem_to_hbm [thread:$0]  %s2001_s25, 16, %s4722_s5, [#allocation4]  }
 0x29d   :  { %2873 = dma.done.wait [#allocation4], 16  }
 0x29e   :  { %2874 = vsyncadd [#allocation4], 4294967280 }
 0x29f   :  { %2007 = vsyncpa [#allocation4], 1 }

</bundles_post_ra>
